<compile_context>
chip_gen: v5e
topology: v5e:2x2
jax: 0.10.0
libtpu: 0.0.40
codegen_flags: <defaults>
</compile_context>

<pallas_src>
import functools

import jax
import jax.numpy as jnp
from jax import lax
from jax.experimental import pallas as pl
from jax.experimental.pallas import tpu as pltpu


def _mha_flash_kernel(x_q_ref, x_kv_ref, wq_ref, wk_ref, wv_ref, wo_ref, o_ref,
                      q_scratch, m_scratch, l_scratch, acc_scratch,
                      *, num_heads, head_size, scaling):
    # x_q_ref  : (tq, H)        query-tile tokens (batch dim squeezed)
    # x_kv_ref : (tk, H)        key/value-tile tokens
    # wq/wk/wv_ref : (H, H)     bf16, resident in VMEM (constant index_map)
    # wo_ref   : (nh, hs, Hpad) bf16 per-head output projection (padded lanes)
    # o_ref    : (tq, Hpad)     output tokens for this (batch, q-tile)
    ki = pl.program_id(2)
    num_kv = pl.num_programs(2)

    @pl.when(ki == 0)
    def _init():
        # Full-width Q projection, one MXU call (N = H); scaling folded into Q.
        q = jnp.dot(x_q_ref[...].astype(jnp.bfloat16), wq_ref[...],
                    preferred_element_type=jnp.float32)
        q_scratch[...] = (q * scaling).astype(jnp.bfloat16)
        m_scratch[...] = jnp.full_like(m_scratch, -jnp.inf)
        l_scratch[...] = jnp.zeros_like(l_scratch)
        acc_scratch[...] = jnp.zeros_like(acc_scratch)

    # Full-width K/V projections for this kv tile (bf16 operands, f32 acc).
    x_kv = x_kv_ref[...].astype(jnp.bfloat16)
    k_bf = jnp.dot(x_kv, wk_ref[...],
                   preferred_element_type=jnp.float32).astype(jnp.bfloat16)
    v_bf = jnp.dot(x_kv, wv_ref[...],
                   preferred_element_type=jnp.float32).astype(jnp.bfloat16)

    for h in range(num_heads):  # static unroll; all carried state is in VMEM scratch
        lo = h * head_size
        q_h = q_scratch[:, lo:lo + head_size]   # (tq, hs) bf16 (already scaled)
        k_h = k_bf[:, lo:lo + head_size]        # (tk, hs) bf16
        v_h = v_bf[:, lo:lo + head_size]        # (tk, hs) bf16

        # Q K^T without an explicit transpose: contract last dims on the MXU.
        s = lax.dot_general(q_h, k_h, (((1,), (1,)), ((), ())),
                            preferred_element_type=jnp.float32)   # (tq, tk) f32
        s = jnp.clip(s, -10000.0, 10000.0)
        # TODO(synk): optional attention mask would be applied here (-inf fill).

        # Online softmax update (f32 elementwise math; unnormalized accumulator).
        m_prev = m_scratch[h]                                      # (tq, 1)
        m_new = jnp.maximum(m_prev, jnp.max(s, axis=-1, keepdims=True))
        alpha = jnp.exp(m_prev - m_new)                            # (tq, 1)
        p = jnp.exp(s - m_new)                                     # (tq, tk) f32
        l_scratch[h] = alpha * l_scratch[h] + jnp.sum(p, axis=-1, keepdims=True)
        pv = jnp.dot(p.astype(jnp.bfloat16), v_h,
                     preferred_element_type=jnp.float32)           # (tq, hs)
        acc_scratch[h] = alpha * acc_scratch[h] + pv
        m_scratch[h] = m_new
        # Dropout(attn) is identity at inference time.

    @pl.when(ki == num_kv - 1)
    def _finalize():
        # Deferred normalization via EUP reciprocal, then per-head output
        # projection accumulated into a full-width (lane-dense) output slab.
        out = jnp.zeros(o_ref.shape, jnp.float32)
        for h in range(num_heads):
            inv_l = pl.reciprocal(l_scratch[h], approx=True)          # (tq, 1)
            ctx_h = (acc_scratch[h] * inv_l).astype(jnp.bfloat16)     # (tq, hs)
            out = out + jnp.dot(ctx_h, wo_ref[h],
                                preferred_element_type=jnp.float32)   # (tq, Hpad)
        o_ref[...] = out.astype(o_ref.dtype)


def _pick_tile(n, candidates=(512, 256, 128, 64, 32, 16, 8)):
    for c in candidates:
        if n % c == 0:
            return c
    return n  # tiny / awkward sizes: one full-extent tile


def myf_attention(x, w_q, w_k, w_v, w_o, num_heads):
    """Pallas equivalent of MyfAttention.forward (mask=None, eval-mode dropout).

    x:   [B, S, H] float32
    w_*: [H, H]    float32
    returns [B, S, H] float32
    """
    B, S, H = x.shape
    assert H % num_heads == 0
    hs = H // num_heads
    scaling = float(hs) ** -0.5

    # Sequence tiling: query tiles (parallel grid axis), kv tiles (reduction).
    tq = _pick_tile(S)
    tk = _pick_tile(S)
    nq = S // tq
    nk = S // tk

    # Lane-dense output: pad output feature dim up to a multiple of 128 so the
    # output stores are unmasked; the zero-padded W_O columns are sliced off.
    H_pad = ((H + 127) // 128) * 128

    # Per-head layout for W_O: wo_h[h] == W_O[h*hs:(h+1)*hs, :].
    wo_h = w_o.reshape(num_heads, hs, H)
    if H_pad != H:
        wo_h = jnp.pad(wo_h, ((0, 0), (0, 0), (0, H_pad - H)))

    # bf16 MXU operands (f32 accumulation happens inside the kernel).
    wq_b = w_q.astype(jnp.bfloat16)
    wk_b = w_k.astype(jnp.bfloat16)
    wv_b = w_v.astype(jnp.bfloat16)
    wo_b = wo_h.astype(jnp.bfloat16)

    kernel = functools.partial(_mha_flash_kernel, num_heads=num_heads,
                               head_size=hs, scaling=scaling)

    out = pl.pallas_call(
        kernel,
        out_shape=jax.ShapeDtypeStruct((B, S, H_pad), x.dtype),
        grid_spec=pltpu.PrefetchScalarGridSpec(
            num_scalar_prefetch=0,
            grid=(B, nq, nk),
            in_specs=[
                # Query-tile slab (batch squeezed; invariant over the kv axis).
                pl.BlockSpec((None, tq, H), lambda b, qi, ki: (b, qi, 0)),
                # Key/value-tile slab.
                pl.BlockSpec((None, tk, H), lambda b, qi, ki: (b, ki, 0)),
                # Weights: constant block index -> DMA'd once, VMEM-resident.
                pl.BlockSpec((H, H), lambda b, qi, ki: (0, 0)),
                pl.BlockSpec((H, H), lambda b, qi, ki: (0, 0)),
                pl.BlockSpec((H, H), lambda b, qi, ki: (0, 0)),
                pl.BlockSpec((num_heads, hs, H_pad), lambda b, qi, ki: (0, 0, 0)),
            ],
            out_specs=pl.BlockSpec((None, tq, H_pad), lambda b, qi, ki: (b, qi, 0)),
            scratch_shapes=[
                pltpu.VMEM((tq, H), jnp.bfloat16),             # scaled Q (persists over ki)
                pltpu.VMEM((num_heads, tq, 1), jnp.float32),   # running row max
                pltpu.VMEM((num_heads, tq, 1), jnp.float32),   # running denominator
                pltpu.VMEM((num_heads, tq, hs), jnp.float32),  # unnormalized context
            ],
        ),
        compiler_params=pltpu.CompilerParams(
            # (batch, q-tiles) parallel -> megacore-shardable even at small B;
            # kv-tile axis is the online-softmax reduction.
            dimension_semantics=("parallel", "parallel", "arbitrary"),
            vmem_limit_bytes=64 * 1024 * 1024,
        ),
    )(x, x, wq_b, wk_b, wv_b, wo_b)

    return out if H_pad == H else out[..., :H]


def _mha_reference(x, w_q, w_k, w_v, w_o, num_heads):
    """Plain-JAX reference (highest matmul precision)."""
    B, S, H = x.shape
    hs = H // num_heads
    scaling = float(hs) ** -0.5
    hp = jax.lax.Precision.HIGHEST
    q = jnp.matmul(x, w_q, precision=hp).reshape(B, S, num_heads, hs).transpose(0, 2, 1, 3)
    k = jnp.matmul(x, w_k, precision=hp).reshape(B, S, num_heads, hs).transpose(0, 2, 1, 3)
    v = jnp.matmul(x, w_v, precision=hp).reshape(B, S, num_heads, hs).transpose(0, 2, 1, 3)
    scores = jnp.einsum("bhqd,bhkd->bhqk", q, k, precision=hp) * scaling
    scores = jnp.clip(scores, -10000.0, 10000.0)
    attn = jax.nn.softmax(scores, axis=-1)
    ctx = jnp.einsum("bhqk,bhkd->bhqd", attn, v, precision=hp)
    ctx = ctx.transpose(0, 2, 1, 3).reshape(B, S, H)
    return jnp.matmul(ctx, w_o, precision=hp)


if __name__ == "__main__":
    key = jax.random.PRNGKey(0)
    kx, kq, kk, kv, ko = jax.random.split(key, 5)

    batch, seq, hidden, num_heads = 2, 8, 32, 4

    x = jax.random.normal(kx, (batch, seq, hidden), dtype=jnp.float32)
    # Matches torch.randn(hidden, hidden) * 0.02 init.
    w_q = (0.02 * jax.random.normal(kq, (hidden, hidden))).astype(jnp.float32)
    w_k = (0.02 * jax.random.normal(kk, (hidden, hidden))).astype(jnp.float32)
    w_v = (0.02 * jax.random.normal(kv, (hidden, hidden))).astype(jnp.float32)
    w_o = (0.02 * jax.random.normal(ko, (hidden, hidden))).astype(jnp.float32)

    out = myf_attention(x, w_q, w_k, w_v, w_o, num_heads)
    out = jax.block_until_ready(out)

    ref = _mha_reference(x, w_q, w_k, w_v, w_o, num_heads)

    assert out.shape == (batch, seq, hidden)
    max_err = float(jnp.max(jnp.abs(out - ref)))
    # Tolerance loosened vs. the all-f32 version: the kernel now uses bf16 MXU
    # operands (with f32 accumulation) and an approx reciprocal, as recommended.
    assert jnp.allclose(out, ref, atol=5e-3, rtol=5e-2), f"max abs err = {max_err}"

    print("KERNEL_OK")
</pallas_src>

<mosaic_0001>
module attributes {stable_mosaic.version = 11 : i64} {
  func.func @_mha_flash_kernel(%arg0: i32, %arg1: i32, %arg2: i32, %arg3: memref<1x8x32xf32, #tpu.memory_space<vmem>>, %arg4: memref<1x8x32xf32, #tpu.memory_space<vmem>>, %arg5: memref<32x32xbf16, #tpu.memory_space<vmem>>, %arg6: memref<32x32xbf16, #tpu.memory_space<vmem>>, %arg7: memref<32x32xbf16, #tpu.memory_space<vmem>>, %arg8: memref<4x8x128xbf16, #tpu.memory_space<vmem>>, %arg9: memref<1x8x128xf32, #tpu.memory_space<vmem>>, %arg10: memref<8x32xbf16, #tpu.memory_space<vmem>>, %arg11: memref<4x8x1xf32, #tpu.memory_space<vmem>>, %arg12: memref<4x8x1xf32, #tpu.memory_space<vmem>>, %arg13: memref<4x8x8xf32, #tpu.memory_space<vmem>>) attributes {dimension_semantics = [#tpu.dimension_semantics<parallel>, #tpu.dimension_semantics<parallel>, #tpu.dimension_semantics<arbitrary>], iteration_bounds = array<i64: 2, 1, 1>, scalar_prefetch = 0 : i64, scratch_operands = 4 : i64, tpu.core_type = #tpu.core_type<tc>, window_params = [{transform_indices = @transform_0, window_bounds = array<i64: 1, 8, 32>}, {transform_indices = @transform_1, window_bounds = array<i64: 1, 8, 32>}, {pipeline_mode = #tpu.pipeline_mode<synchronous>, transform_indices = @transform_2, window_bounds = array<i64: 32, 32>}, {pipeline_mode = #tpu.pipeline_mode<synchronous>, transform_indices = @transform_3, window_bounds = array<i64: 32, 32>}, {pipeline_mode = #tpu.pipeline_mode<synchronous>, transform_indices = @transform_4, window_bounds = array<i64: 32, 32>}, {pipeline_mode = #tpu.pipeline_mode<synchronous>, transform_indices = @transform_5, window_bounds = array<i64: 4, 8, 128>}, {transform_indices = @transform_6, window_bounds = array<i64: 1, 8, 128>}]} {
    %c0_i32 = arith.constant 0 : i32
    %0 = arith.cmpi eq, %arg2, %c0_i32 : i32
    %1 = arith.extui %0 : i1 to i32
    %c0_i32_0 = arith.constant 0 : i32
    %2 = arith.cmpi ne, %1, %c0_i32_0 : i32
    scf.if %2 {
      %c0_108 = arith.constant 0 : index
      %c0_109 = arith.constant 0 : index
      %c0_110 = arith.constant 0 : index
      %175 = vector.load %arg3[%c0_108, %c0_109, %c0_110] : memref<1x8x32xf32, #tpu.memory_space<vmem>>, vector<1x8x32xf32>
      %176 = vector.shape_cast %175 : vector<1x8x32xf32> to vector<8x32xf32>
      %177 = arith.truncf %176 : vector<8x32xf32> to vector<8x32xbf16>
      %c0_111 = arith.constant 0 : index
      %c0_112 = arith.constant 0 : index
      %178 = vector.load %arg5[%c0_111, %c0_112] : memref<32x32xbf16, #tpu.memory_space<vmem>>, vector<32x32xbf16>
      %cst_113 = arith.constant dense<0.000000e+00> : vector<8x32xf32>
      %179 = tpu.matmul %177, %178, %cst_113 {dimension_numbers = #tpu.dot_dimension_numbers<[1], [0], [0], [1], [0, 0, 1, 1], [], []>} : vector<8x32xbf16>, vector<32x32xbf16>, vector<8x32xf32> -> vector<8x32xf32>
      %cst_114 = arith.constant 0.353553385 : f32
      %180 = vector.broadcast %cst_114 : f32 to vector<8x32xf32>
      %181 = arith.mulf %179, %180 : vector<8x32xf32>
      %182 = arith.truncf %181 : vector<8x32xf32> to vector<8x32xbf16>
      %c0_115 = arith.constant 0 : index
      %c0_116 = arith.constant 0 : index
      %183 = vector.load %arg10[%c0_115, %c0_116] : memref<8x32xbf16, #tpu.memory_space<vmem>>, vector<8x32xbf16>
      tpu.vector_store %arg10[%c0_115, %c0_116], %182 {strides = array<i32>} : memref<8x32xbf16, #tpu.memory_space<vmem>>, vector<8x32xbf16>,
      %cst_117 = arith.constant 0xFF800000 : f32
      %184 = vector.broadcast %cst_117 : f32 to vector<4x8x1xf32>
      %c0_118 = arith.constant 0 : index
      %c0_119 = arith.constant 0 : index
      %c0_120 = arith.constant 0 : index
      %185 = vector.load %arg11[%c0_118, %c0_119, %c0_120] : memref<4x8x1xf32, #tpu.memory_space<vmem>>, vector<4x8x1xf32>
      tpu.vector_store %arg11[%c0_118, %c0_119, %c0_120], %184 {strides = array<i32>} : memref<4x8x1xf32, #tpu.memory_space<vmem>>, vector<4x8x1xf32>,
      %cst_121 = arith.constant 0.000000e+00 : f32
      %186 = vector.broadcast %cst_121 : f32 to vector<4x8x1xf32>
      %c0_122 = arith.constant 0 : index
      %c0_123 = arith.constant 0 : index
      %c0_124 = arith.constant 0 : index
      %187 = vector.load %arg12[%c0_122, %c0_123, %c0_124] : memref<4x8x1xf32, #tpu.memory_space<vmem>>, vector<4x8x1xf32>
      tpu.vector_store %arg12[%c0_122, %c0_123, %c0_124], %186 {strides = array<i32>} : memref<4x8x1xf32, #tpu.memory_space<vmem>>, vector<4x8x1xf32>,
      %cst_125 = arith.constant 0.000000e+00 : f32
      %188 = vector.broadcast %cst_125 : f32 to vector<4x8x8xf32>
      %c0_126 = arith.constant 0 : index
      %c0_127 = arith.constant 0 : index
      %c0_128 = arith.constant 0 : index
      %189 = vector.load %arg13[%c0_126, %c0_127, %c0_128] : memref<4x8x8xf32, #tpu.memory_space<vmem>>, vector<4x8x8xf32>
      tpu.vector_store %arg13[%c0_126, %c0_127, %c0_128], %188 {strides = array<i32>} : memref<4x8x8xf32, #tpu.memory_space<vmem>>, vector<4x8x8xf32>,
    } else {
    }
    %c0 = arith.constant 0 : index
    %c0_1 = arith.constant 0 : index
    %c0_2 = arith.constant 0 : index
    %3 = vector.load %arg4[%c0, %c0_1, %c0_2] : memref<1x8x32xf32, #tpu.memory_space<vmem>>, vector<1x8x32xf32>
    %4 = vector.shape_cast %3 : vector<1x8x32xf32> to vector<8x32xf32>
    %5 = arith.truncf %4 : vector<8x32xf32> to vector<8x32xbf16>
    %c0_3 = arith.constant 0 : index
    %c0_4 = arith.constant 0 : index
    %6 = vector.load %arg6[%c0_3, %c0_4] : memref<32x32xbf16, #tpu.memory_space<vmem>>, vector<32x32xbf16>
    %cst = arith.constant dense<0.000000e+00> : vector<8x32xf32>
    %7 = tpu.matmul %5, %6, %cst {dimension_numbers = #tpu.dot_dimension_numbers<[1], [0], [0], [1], [0, 0, 1, 1], [], []>} : vector<8x32xbf16>, vector<32x32xbf16>, vector<8x32xf32> -> vector<8x32xf32>
    %8 = arith.truncf %7 : vector<8x32xf32> to vector<8x32xbf16>
    %c0_5 = arith.constant 0 : index
    %c0_6 = arith.constant 0 : index
    %9 = vector.load %arg7[%c0_5, %c0_6] : memref<32x32xbf16, #tpu.memory_space<vmem>>, vector<32x32xbf16>
    %cst_7 = arith.constant dense<0.000000e+00> : vector<8x32xf32>
    %10 = tpu.matmul %5, %9, %cst_7 {dimension_numbers = #tpu.dot_dimension_numbers<[1], [0], [0], [1], [0, 0, 1, 1], [], []>} : vector<8x32xbf16>, vector<32x32xbf16>, vector<8x32xf32> -> vector<8x32xf32>
    %11 = arith.truncf %10 : vector<8x32xf32> to vector<8x32xbf16>
    %c0_8 = arith.constant 0 : index
    %c0_9 = arith.constant 0 : index
    %12 = vector.load %arg10[%c0_8, %c0_9] : memref<8x32xbf16, #tpu.memory_space<vmem>>, vector<8x8xbf16>
    %13 = vector.extract_strided_slice %8 {offsets = [0, 0], sizes = [8, 8], strides = [1, 1]} : vector<8x32xbf16> to vector<8x8xbf16>
    %14 = vector.extract_strided_slice %11 {offsets = [0, 0], sizes = [8, 8], strides = [1, 1]} : vector<8x32xbf16> to vector<8x8xbf16>
    %cst_10 = arith.constant dense<0.000000e+00> : vector<8x8xf32>
    %15 = tpu.matmul %12, %13, %cst_10 {dimension_numbers = #tpu.dot_dimension_numbers<[1], [1], [0], [0], [0, 0, 1, 0], [], []>} : vector<8x8xbf16>, vector<8x8xbf16>, vector<8x8xf32> -> vector<8x8xf32>
    %cst_11 = arith.constant -1.000000e+04 : f32
    %cst_12 = arith.constant 1.000000e+04 : f32
    %16 = vector.broadcast %cst_11 : f32 to vector<8x8xf32>
    %17 = arith.maximumf %16, %15 : vector<8x8xf32>
    %18 = vector.broadcast %cst_12 : f32 to vector<8x8xf32>
    %19 = arith.minimumf %18, %17 : vector<8x8xf32>
    %c0_13 = arith.constant 0 : index
    %c0_14 = arith.constant 0 : index
    %c0_15 = arith.constant 0 : index
    %20 = vector.load %arg11[%c0_13, %c0_14, %c0_15] : memref<4x8x1xf32, #tpu.memory_space<vmem>>, vector<1x8x1xf32>
    %21 = vector.shape_cast %20 : vector<1x8x1xf32> to vector<8x1xf32>
    %cst_16 = arith.constant dense<0xFF800000> : vector<8xf32>
    %22 = vector.multi_reduction <maximumf>, %19, %cst_16 [1] : vector<8x8xf32> to vector<8xf32>
    %23 = vector.shape_cast %22 : vector<8xf32> to vector<8x1xf32>
    %24 = arith.maximumf %21, %23 : vector<8x1xf32>
    %25 = arith.subf %21, %24 : vector<8x1xf32>
    %26 = math.exp %25 : vector<8x1xf32>
    %27 = vector.broadcast %24 : vector<8x1xf32> to vector<8x8xf32>
    %28 = arith.subf %19, %27 : vector<8x8xf32>
    %29 = math.exp %28 : vector<8x8xf32>
    %c0_17 = arith.constant 0 : index
    %c0_18 = arith.constant 0 : index
    %c0_19 = arith.constant 0 : index
    %30 = vector.load %arg12[%c0_17, %c0_18, %c0_19] : memref<4x8x1xf32, #tpu.memory_space<vmem>>, vector<1x8x1xf32>
    %31 = vector.shape_cast %30 : vector<1x8x1xf32> to vector<8x1xf32>
    %32 = arith.mulf %26, %31 : vector<8x1xf32>
    %cst_20 = arith.constant dense<0.000000e+00> : vector<8xf32>
    %33 = vector.multi_reduction <add>, %29, %cst_20 [1] : vector<8x8xf32> to vector<8xf32>
    %34 = vector.shape_cast %33 : vector<8xf32> to vector<8x1xf32>
    %35 = arith.addf %32, %34 : vector<8x1xf32>
    %c0_21 = arith.constant 0 : index
    %c0_22 = arith.constant 0 : index
    %c0_23 = arith.constant 0 : index
    %36 = vector.load %arg12[%c0_21, %c0_22, %c0_23] : memref<4x8x1xf32, #tpu.memory_space<vmem>>, vector<1x8x1xf32>
    %37 = vector.shape_cast %36 : vector<1x8x1xf32> to vector<8x1xf32>
    %38 = vector.shape_cast %35 : vector<8x1xf32> to vector<1x8x1xf32>
    tpu.vector_store %arg12[%c0_21, %c0_22, %c0_23], %38 {strides = array<i32>} : memref<4x8x1xf32, #tpu.memory_space<vmem>>, vector<1x8x1xf32>,
    %39 = arith.truncf %29 : vector<8x8xf32> to vector<8x8xbf16>
    %cst_24 = arith.constant dense<0.000000e+00> : vector<8x8xf32>
    %40 = tpu.matmul %39, %14, %cst_24 {dimension_numbers = #tpu.dot_dimension_numbers<[1], [0], [0], [1], [0, 0, 1, 1], [], []>} : vector<8x8xbf16>, vector<8x8xbf16>, vector<8x8xf32> -> vector<8x8xf32>
    %c0_25 = arith.constant 0 : index
    %c0_26 = arith.constant 0 : index
    %c0_27 = arith.constant 0 : index
    %41 = vector.load %arg13[%c0_25, %c0_26, %c0_27] : memref<4x8x8xf32, #tpu.memory_space<vmem>>, vector<1x8x8xf32>
    %42 = vector.shape_cast %41 : vector<1x8x8xf32> to vector<8x8xf32>
    %43 = vector.broadcast %26 : vector<8x1xf32> to vector<8x8xf32>
    %44 = arith.mulf %43, %42 : vector<8x8xf32>
    %45 = arith.addf %44, %40 : vector<8x8xf32>
    %c0_28 = arith.constant 0 : index
    %c0_29 = arith.constant 0 : index
    %c0_30 = arith.constant 0 : index
    %46 = vector.load %arg13[%c0_28, %c0_29, %c0_30] : memref<4x8x8xf32, #tpu.memory_space<vmem>>, vector<1x8x8xf32>
    %47 = vector.shape_cast %46 : vector<1x8x8xf32> to vector<8x8xf32>
    %48 = vector.shape_cast %45 : vector<8x8xf32> to vector<1x8x8xf32>
    tpu.vector_store %arg13[%c0_28, %c0_29, %c0_30], %48 {strides = array<i32>} : memref<4x8x8xf32, #tpu.memory_space<vmem>>, vector<1x8x8xf32>,
    %c0_31 = arith.constant 0 : index
    %c0_32 = arith.constant 0 : index
    %c0_33 = arith.constant 0 : index
    %49 = vector.load %arg11[%c0_31, %c0_32, %c0_33] : memref<4x8x1xf32, #tpu.memory_space<vmem>>, vector<1x8x1xf32>
    %50 = vector.shape_cast %49 : vector<1x8x1xf32> to vector<8x1xf32>
    %51 = vector.shape_cast %24 : vector<8x1xf32> to vector<1x8x1xf32>
    tpu.vector_store %arg11[%c0_31, %c0_32, %c0_33], %51 {strides = array<i32>} : memref<4x8x1xf32, #tpu.memory_space<vmem>>, vector<1x8x1xf32>,
    %c0_34 = arith.constant 0 : index
    %c8 = arith.constant 8 : index
    %52 = vector.load %arg10[%c0_34, %c8] : memref<8x32xbf16, #tpu.memory_space<vmem>>, vector<8x8xbf16>
    %53 = vector.extract_strided_slice %8 {offsets = [0, 8], sizes = [8, 8], strides = [1, 1]} : vector<8x32xbf16> to vector<8x8xbf16>
    %54 = vector.extract_strided_slice %11 {offsets = [0, 8], sizes = [8, 8], strides = [1, 1]} : vector<8x32xbf16> to vector<8x8xbf16>
    %cst_35 = arith.constant dense<0.000000e+00> : vector<8x8xf32>
    %55 = tpu.matmul %52, %53, %cst_35 {dimension_numbers = #tpu.dot_dimension_numbers<[1], [1], [0], [0], [0, 0, 1, 0], [], []>} : vector<8x8xbf16>, vector<8x8xbf16>, vector<8x8xf32> -> vector<8x8xf32>
    %cst_36 = arith.constant -1.000000e+04 : f32
    %cst_37 = arith.constant 1.000000e+04 : f32
    %56 = vector.broadcast %cst_36 : f32 to vector<8x8xf32>
    %57 = arith.maximumf %56, %55 : vector<8x8xf32>
    %58 = vector.broadcast %cst_37 : f32 to vector<8x8xf32>
    %59 = arith.minimumf %58, %57 : vector<8x8xf32>
    %c1 = arith.constant 1 : index
    %c0_38 = arith.constant 0 : index
    %c0_39 = arith.constant 0 : index
    %60 = vector.load %arg11[%c1, %c0_38, %c0_39] : memref<4x8x1xf32, #tpu.memory_space<vmem>>, vector<1x8x1xf32>
    %61 = vector.shape_cast %60 : vector<1x8x1xf32> to vector<8x1xf32>
    %cst_40 = arith.constant dense<0xFF800000> : vector<8xf32>
    %62 = vector.multi_reduction <maximumf>, %59, %cst_40 [1] : vector<8x8xf32> to vector<8xf32>
    %63 = vector.shape_cast %62 : vector<8xf32> to vector<8x1xf32>
    %64 = arith.maximumf %61, %63 : vector<8x1xf32>
    %65 = arith.subf %61, %64 : vector<8x1xf32>
    %66 = math.exp %65 : vector<8x1xf32>
    %67 = vector.broadcast %64 : vector<8x1xf32> to vector<8x8xf32>
    %68 = arith.subf %59, %67 : vector<8x8xf32>
    %69 = math.exp %68 : vector<8x8xf32>
    %c1_41 = arith.constant 1 : index
    %c0_42 = arith.constant 0 : index
    %c0_43 = arith.constant 0 : index
    %70 = vector.load %arg12[%c1_41, %c0_42, %c0_43] : memref<4x8x1xf32, #tpu.memory_space<vmem>>, vector<1x8x1xf32>
    %71 = vector.shape_cast %70 : vector<1x8x1xf32> to vector<8x1xf32>
    %72 = arith.mulf %66, %71 : vector<8x1xf32>
    %cst_44 = arith.constant dense<0.000000e+00> : vector<8xf32>
    %73 = vector.multi_reduction <add>, %69, %cst_44 [1] : vector<8x8xf32> to vector<8xf32>
    %74 = vector.shape_cast %73 : vector<8xf32> to vector<8x1xf32>
    %75 = arith.addf %72, %74 : vector<8x1xf32>
    %c1_45 = arith.constant 1 : index
    %c0_46 = arith.constant 0 : index
    %c0_47 = arith.constant 0 : index
    %76 = vector.load %arg12[%c1_45, %c0_46, %c0_47] : memref<4x8x1xf32, #tpu.memory_space<vmem>>, vector<1x8x1xf32>
    %77 = vector.shape_cast %76 : vector<1x8x1xf32> to vector<8x1xf32>
    %78 = vector.shape_cast %75 : vector<8x1xf32> to vector<1x8x1xf32>
    tpu.vector_store %arg12[%c1_45, %c0_46, %c0_47], %78 {strides = array<i32>} : memref<4x8x1xf32, #tpu.memory_space<vmem>>, vector<1x8x1xf32>,
    %79 = arith.truncf %69 : vector<8x8xf32> to vector<8x8xbf16>
    %cst_48 = arith.constant dense<0.000000e+00> : vector<8x8xf32>
    %80 = tpu.matmul %79, %54, %cst_48 {dimension_numbers = #tpu.dot_dimension_numbers<[1], [0], [0], [1], [0, 0, 1, 1], [], []>} : vector<8x8xbf16>, vector<8x8xbf16>, vector<8x8xf32> -> vector<8x8xf32>
    %c1_49 = arith.constant 1 : index
    %c0_50 = arith.constant 0 : index
    %c0_51 = arith.constant 0 : index
    %81 = vector.load %arg13[%c1_49, %c0_50, %c0_51] : memref<4x8x8xf32, #tpu.memory_space<vmem>>, vector<1x8x8xf32>
    %82 = vector.shape_cast %81 : vector<1x8x8xf32> to vector<8x8xf32>
    %83 = vector.broadcast %66 : vector<8x1xf32> to vector<8x8xf32>
    %84 = arith.mulf %83, %82 : vector<8x8xf32>
    %85 = arith.addf %84, %80 : vector<8x8xf32>
    %c1_52 = arith.constant 1 : index
    %c0_53 = arith.constant 0 : index
    %c0_54 = arith.constant 0 : index
    %86 = vector.load %arg13[%c1_52, %c0_53, %c0_54] : memref<4x8x8xf32, #tpu.memory_space<vmem>>, vector<1x8x8xf32>
    %87 = vector.shape_cast %86 : vector<1x8x8xf32> to vector<8x8xf32>
    %88 = vector.shape_cast %85 : vector<8x8xf32> to vector<1x8x8xf32>
    tpu.vector_store %arg13[%c1_52, %c0_53, %c0_54], %88 {strides = array<i32>} : memref<4x8x8xf32, #tpu.memory_space<vmem>>, vector<1x8x8xf32>,
    %c1_55 = arith.constant 1 : index
    %c0_56 = arith.constant 0 : index
    %c0_57 = arith.constant 0 : index
    %89 = vector.load %arg11[%c1_55, %c0_56, %c0_57] : memref<4x8x1xf32, #tpu.memory_space<vmem>>, vector<1x8x1xf32>
    %90 = vector.shape_cast %89 : vector<1x8x1xf32> to vector<8x1xf32>
    %91 = vector.shape_cast %64 : vector<8x1xf32> to vector<1x8x1xf32>
    tpu.vector_store %arg11[%c1_55, %c0_56, %c0_57], %91 {strides = array<i32>} : memref<4x8x1xf32, #tpu.memory_space<vmem>>, vector<1x8x1xf32>,
    %c0_58 = arith.constant 0 : index
    %c16 = arith.constant 16 : index
    %92 = vector.load %arg10[%c0_58, %c16] : memref<8x32xbf16, #tpu.memory_space<vmem>>, vector<8x8xbf16>
    %93 = vector.extract_strided_slice %8 {offsets = [0, 16], sizes = [8, 8], strides = [1, 1]} : vector<8x32xbf16> to vector<8x8xbf16>
    %94 = vector.extract_strided_slice %11 {offsets = [0, 16], sizes = [8, 8], strides = [1, 1]} : vector<8x32xbf16> to vector<8x8xbf16>
    %cst_59 = arith.constant dense<0.000000e+00> : vector<8x8xf32>
    %95 = tpu.matmul %92, %93, %cst_59 {dimension_numbers = #tpu.dot_dimension_numbers<[1], [1], [0], [0], [0, 0, 1, 0], [], []>} : vector<8x8xbf16>, vector<8x8xbf16>, vector<8x8xf32> -> vector<8x8xf32>
    %cst_60 = arith.constant -1.000000e+04 : f32
    %cst_61 = arith.constant 1.000000e+04 : f32
    %96 = vector.broadcast %cst_60 : f32 to vector<8x8xf32>
    %97 = arith.maximumf %96, %95 : vector<8x8xf32>
    %98 = vector.broadcast %cst_61 : f32 to vector<8x8xf32>
    %99 = arith.minimumf %98, %97 : vector<8x8xf32>
    %c2 = arith.constant 2 : index
    %c0_62 = arith.constant 0 : index
    %c0_63 = arith.constant 0 : index
    %100 = vector.load %arg11[%c2, %c0_62, %c0_63] : memref<4x8x1xf32, #tpu.memory_space<vmem>>, vector<1x8x1xf32>
    %101 = vector.shape_cast %100 : vector<1x8x1xf32> to vector<8x1xf32>
    %cst_64 = arith.constant dense<0xFF800000> : vector<8xf32>
    %102 = vector.multi_reduction <maximumf>, %99, %cst_64 [1] : vector<8x8xf32> to vector<8xf32>
    %103 = vector.shape_cast %102 : vector<8xf32> to vector<8x1xf32>
    %104 = arith.maximumf %101, %103 : vector<8x1xf32>
    %105 = arith.subf %101, %104 : vector<8x1xf32>
    %106 = math.exp %105 : vector<8x1xf32>
    %107 = vector.broadcast %104 : vector<8x1xf32> to vector<8x8xf32>
    %108 = arith.subf %99, %107 : vector<8x8xf32>
    %109 = math.exp %108 : vector<8x8xf32>
    %c2_65 = arith.constant 2 : index
    %c0_66 = arith.constant 0 : index
    %c0_67 = arith.constant 0 : index
    %110 = vector.load %arg12[%c2_65, %c0_66, %c0_67] : memref<4x8x1xf32, #tpu.memory_space<vmem>>, vector<1x8x1xf32>
    %111 = vector.shape_cast %110 : vector<1x8x1xf32> to vector<8x1xf32>
    %112 = arith.mulf %106, %111 : vector<8x1xf32>
    %cst_68 = arith.constant dense<0.000000e+00> : vector<8xf32>
    %113 = vector.multi_reduction <add>, %109, %cst_68 [1] : vector<8x8xf32> to vector<8xf32>
    %114 = vector.shape_cast %113 : vector<8xf32> to vector<8x1xf32>
    %115 = arith.addf %112, %114 : vector<8x1xf32>
    %c2_69 = arith.constant 2 : index
    %c0_70 = arith.constant 0 : index
    %c0_71 = arith.constant 0 : index
    %116 = vector.load %arg12[%c2_69, %c0_70, %c0_71] : memref<4x8x1xf32, #tpu.memory_space<vmem>>, vector<1x8x1xf32>
    %117 = vector.shape_cast %116 : vector<1x8x1xf32> to vector<8x1xf32>
    %118 = vector.shape_cast %115 : vector<8x1xf32> to vector<1x8x1xf32>
    tpu.vector_store %arg12[%c2_69, %c0_70, %c0_71], %118 {strides = array<i32>} : memref<4x8x1xf32, #tpu.memory_space<vmem>>, vector<1x8x1xf32>,
    %119 = arith.truncf %109 : vector<8x8xf32> to vector<8x8xbf16>
    %cst_72 = arith.constant dense<0.000000e+00> : vector<8x8xf32>
    %120 = tpu.matmul %119, %94, %cst_72 {dimension_numbers = #tpu.dot_dimension_numbers<[1], [0], [0], [1], [0, 0, 1, 1], [], []>} : vector<8x8xbf16>, vector<8x8xbf16>, vector<8x8xf32> -> vector<8x8xf32>
    %c2_73 = arith.constant 2 : index
    %c0_74 = arith.constant 0 : index
    %c0_75 = arith.constant 0 : index
    %121 = vector.load %arg13[%c2_73, %c0_74, %c0_75] : memref<4x8x8xf32, #tpu.memory_space<vmem>>, vector<1x8x8xf32>
    %122 = vector.shape_cast %121 : vector<1x8x8xf32> to vector<8x8xf32>
    %123 = vector.broadcast %106 : vector<8x1xf32> to vector<8x8xf32>
    %124 = arith.mulf %123, %122 : vector<8x8xf32>
    %125 = arith.addf %124, %120 : vector<8x8xf32>
    %c2_76 = arith.constant 2 : index
    %c0_77 = arith.constant 0 : index
    %c0_78 = arith.constant 0 : index
    %126 = vector.load %arg13[%c2_76, %c0_77, %c0_78] : memref<4x8x8xf32, #tpu.memory_space<vmem>>, vector<1x8x8xf32>
    %127 = vector.shape_cast %126 : vector<1x8x8xf32> to vector<8x8xf32>
    %128 = vector.shape_cast %125 : vector<8x8xf32> to vector<1x8x8xf32>
    tpu.vector_store %arg13[%c2_76, %c0_77, %c0_78], %128 {strides = array<i32>} : memref<4x8x8xf32, #tpu.memory_space<vmem>>, vector<1x8x8xf32>,
    %c2_79 = arith.constant 2 : index
    %c0_80 = arith.constant 0 : index
    %c0_81 = arith.constant 0 : index
    %129 = vector.load %arg11[%c2_79, %c0_80, %c0_81] : memref<4x8x1xf32, #tpu.memory_space<vmem>>, vector<1x8x1xf32>
    %130 = vector.shape_cast %129 : vector<1x8x1xf32> to vector<8x1xf32>
    %131 = vector.shape_cast %104 : vector<8x1xf32> to vector<1x8x1xf32>
    tpu.vector_store %arg11[%c2_79, %c0_80, %c0_81], %131 {strides = array<i32>} : memref<4x8x1xf32, #tpu.memory_space<vmem>>, vector<1x8x1xf32>,
    %c0_82 = arith.constant 0 : index
    %c24 = arith.constant 24 : index
    %132 = vector.load %arg10[%c0_82, %c24] : memref<8x32xbf16, #tpu.memory_space<vmem>>, vector<8x8xbf16>
    %133 = vector.extract_strided_slice %8 {offsets = [0, 24], sizes = [8, 8], strides = [1, 1]} : vector<8x32xbf16> to vector<8x8xbf16>
    %134 = vector.extract_strided_slice %11 {offsets = [0, 24], sizes = [8, 8], strides = [1, 1]} : vector<8x32xbf16> to vector<8x8xbf16>
    %cst_83 = arith.constant dense<0.000000e+00> : vector<8x8xf32>
    %135 = tpu.matmul %132, %133, %cst_83 {dimension_numbers = #tpu.dot_dimension_numbers<[1], [1], [0], [0], [0, 0, 1, 0], [], []>} : vector<8x8xbf16>, vector<8x8xbf16>, vector<8x8xf32> -> vector<8x8xf32>
    %cst_84 = arith.constant -1.000000e+04 : f32
    %cst_85 = arith.constant 1.000000e+04 : f32
    %136 = vector.broadcast %cst_84 : f32 to vector<8x8xf32>
    %137 = arith.maximumf %136, %135 : vector<8x8xf32>
    %138 = vector.broadcast %cst_85 : f32 to vector<8x8xf32>
    %139 = arith.minimumf %138, %137 : vector<8x8xf32>
    %c3 = arith.constant 3 : index
    %c0_86 = arith.constant 0 : index
    %c0_87 = arith.constant 0 : index
    %140 = vector.load %arg11[%c3, %c0_86, %c0_87] : memref<4x8x1xf32, #tpu.memory_space<vmem>>, vector<1x8x1xf32>
    %141 = vector.shape_cast %140 : vector<1x8x1xf32> to vector<8x1xf32>
    %cst_88 = arith.constant dense<0xFF800000> : vector<8xf32>
    %142 = vector.multi_reduction <maximumf>, %139, %cst_88 [1] : vector<8x8xf32> to vector<8xf32>
    %143 = vector.shape_cast %142 : vector<8xf32> to vector<8x1xf32>
    %144 = arith.maximumf %141, %143 : vector<8x1xf32>
    %145 = arith.subf %141, %144 : vector<8x1xf32>
    %146 = math.exp %145 : vector<8x1xf32>
    %147 = vector.broadcast %144 : vector<8x1xf32> to vector<8x8xf32>
    %148 = arith.subf %139, %147 : vector<8x8xf32>
    %149 = math.exp %148 : vector<8x8xf32>
    %c3_89 = arith.constant 3 : index
    %c0_90 = arith.constant 0 : index
    %c0_91 = arith.constant 0 : index
    %150 = vector.load %arg12[%c3_89, %c0_90, %c0_91] : memref<4x8x1xf32, #tpu.memory_space<vmem>>, vector<1x8x1xf32>
    %151 = vector.shape_cast %150 : vector<1x8x1xf32> to vector<8x1xf32>
    %152 = arith.mulf %146, %151 : vector<8x1xf32>
    %cst_92 = arith.constant dense<0.000000e+00> : vector<8xf32>
    %153 = vector.multi_reduction <add>, %149, %cst_92 [1] : vector<8x8xf32> to vector<8xf32>
    %154 = vector.shape_cast %153 : vector<8xf32> to vector<8x1xf32>
    %155 = arith.addf %152, %154 : vector<8x1xf32>
    %c3_93 = arith.constant 3 : index
    %c0_94 = arith.constant 0 : index
    %c0_95 = arith.constant 0 : index
    %156 = vector.load %arg12[%c3_93, %c0_94, %c0_95] : memref<4x8x1xf32, #tpu.memory_space<vmem>>, vector<1x8x1xf32>
    %157 = vector.shape_cast %156 : vector<1x8x1xf32> to vector<8x1xf32>
    %158 = vector.shape_cast %155 : vector<8x1xf32> to vector<1x8x1xf32>
    tpu.vector_store %arg12[%c3_93, %c0_94, %c0_95], %158 {strides = array<i32>} : memref<4x8x1xf32, #tpu.memory_space<vmem>>, vector<1x8x1xf32>,
    %159 = arith.truncf %149 : vector<8x8xf32> to vector<8x8xbf16>
    %cst_96 = arith.constant dense<0.000000e+00> : vector<8x8xf32>
    %160 = tpu.matmul %159, %134, %cst_96 {dimension_numbers = #tpu.dot_dimension_numbers<[1], [0], [0], [1], [0, 0, 1, 1], [], []>} : vector<8x8xbf16>, vector<8x8xbf16>, vector<8x8xf32> -> vector<8x8xf32>
    %c3_97 = arith.constant 3 : index
    %c0_98 = arith.constant 0 : index
    %c0_99 = arith.constant 0 : index
    %161 = vector.load %arg13[%c3_97, %c0_98, %c0_99] : memref<4x8x8xf32, #tpu.memory_space<vmem>>, vector<1x8x8xf32>
    %162 = vector.shape_cast %161 : vector<1x8x8xf32> to vector<8x8xf32>
    %163 = vector.broadcast %146 : vector<8x1xf32> to vector<8x8xf32>
    %164 = arith.mulf %163, %162 : vector<8x8xf32>
    %165 = arith.addf %164, %160 : vector<8x8xf32>
    %c3_100 = arith.constant 3 : index
    %c0_101 = arith.constant 0 : index
    %c0_102 = arith.constant 0 : index
    %166 = vector.load %arg13[%c3_100, %c0_101, %c0_102] : memref<4x8x8xf32, #tpu.memory_space<vmem>>, vector<1x8x8xf32>
    %167 = vector.shape_cast %166 : vector<1x8x8xf32> to vector<8x8xf32>
    %168 = vector.shape_cast %165 : vector<8x8xf32> to vector<1x8x8xf32>
    tpu.vector_store %arg13[%c3_100, %c0_101, %c0_102], %168 {strides = array<i32>} : memref<4x8x8xf32, #tpu.memory_space<vmem>>, vector<1x8x8xf32>,
    %c3_103 = arith.constant 3 : index
    %c0_104 = arith.constant 0 : index
    %c0_105 = arith.constant 0 : index
    %169 = vector.load %arg11[%c3_103, %c0_104, %c0_105] : memref<4x8x1xf32, #tpu.memory_space<vmem>>, vector<1x8x1xf32>
    %170 = vector.shape_cast %169 : vector<1x8x1xf32> to vector<8x1xf32>
    %171 = vector.shape_cast %144 : vector<8x1xf32> to vector<1x8x1xf32>
    tpu.vector_store %arg11[%c3_103, %c0_104, %c0_105], %171 {strides = array<i32>} : memref<4x8x1xf32, #tpu.memory_space<vmem>>, vector<1x8x1xf32>,
    %c0_i32_106 = arith.constant 0 : i32
    %172 = arith.cmpi eq, %arg2, %c0_i32_106 : i32
    %173 = arith.extui %172 : i1 to i32
    %c0_i32_107 = arith.constant 0 : i32
    %174 = arith.cmpi ne, %173, %c0_i32_107 : i32
    scf.if %174 {
      %cst_108 = arith.constant 0.000000e+00 : f32
      %175 = vector.broadcast %cst_108 : f32 to vector<8x128xf32>
      %c0_109 = arith.constant 0 : index
      %c0_110 = arith.constant 0 : index
      %c0_111 = arith.constant 0 : index
      %176 = vector.load %arg12[%c0_109, %c0_110, %c0_111] : memref<4x8x1xf32, #tpu.memory_space<vmem>>, vector<1x8x1xf32>
      %177 = vector.shape_cast %176 : vector<1x8x1xf32> to vector<8x1xf32>
      %178 = tpu.reciprocal %177 {approx = true} : vector<8x1xf32> -> vector<8x1xf32>
      %c0_112 = arith.constant 0 : index
      %c0_113 = arith.constant 0 : index
      %c0_114 = arith.constant 0 : index
      %179 = vector.load %arg13[%c0_112, %c0_113, %c0_114] : memref<4x8x8xf32, #tpu.memory_space<vmem>>, vector<1x8x8xf32>
      %180 = vector.shape_cast %179 : vector<1x8x8xf32> to vector<8x8xf32>
      %181 = vector.broadcast %178 : vector<8x1xf32> to vector<8x8xf32>
      %182 = arith.mulf %180, %181 : vector<8x8xf32>
      %183 = arith.truncf %182 : vector<8x8xf32> to vector<8x8xbf16>
      %c0_115 = arith.constant 0 : index
      %c0_116 = arith.constant 0 : index
      %c0_117 = arith.constant 0 : index
      %184 = vector.load %arg8[%c0_115, %c0_116, %c0_117] : memref<4x8x128xbf16, #tpu.memory_space<vmem>>, vector<1x8x128xbf16>
      %185 = vector.shape_cast %184 : vector<1x8x128xbf16> to vector<8x128xbf16>
      %cst_118 = arith.constant dense<0.000000e+00> : vector<8x128xf32>
      %186 = tpu.matmul %183, %185, %cst_118 {dimension_numbers = #tpu.dot_dimension_numbers<[1], [0], [0], [1], [0, 0, 1, 1], [], []>} : vector<8x8xbf16>, vector<8x128xbf16>, vector<8x128xf32> -> vector<8x128xf32>
      %187 = arith.addf %175, %186 : vector<8x128xf32>
      %c1_119 = arith.constant 1 : index
      %c0_120 = arith.constant 0 : index
      %c0_121 = arith.constant 0 : index
      %188 = vector.load %arg12[%c1_119, %c0_120, %c0_121] : memref<4x8x1xf32, #tpu.memory_space<vmem>>, vector<1x8x1xf32>
      %189 = vector.shape_cast %188 : vector<1x8x1xf32> to vector<8x1xf32>
      %190 = tpu.reciprocal %189 {approx = true} : vector<8x1xf32> -> vector<8x1xf32>
      %c1_122 = arith.constant 1 : index
      %c0_123 = arith.constant 0 : index
      %c0_124 = arith.constant 0 : index
      %191 = vector.load %arg13[%c1_122, %c0_123, %c0_124] : memref<4x8x8xf32, #tpu.memory_space<vmem>>, vector<1x8x8xf32>
      %192 = vector.shape_cast %191 : vector<1x8x8xf32> to vector<8x8xf32>
      %193 = vector.broadcast %190 : vector<8x1xf32> to vector<8x8xf32>
      %194 = arith.mulf %192, %193 : vector<8x8xf32>
      %195 = arith.truncf %194 : vector<8x8xf32> to vector<8x8xbf16>
      %c1_125 = arith.constant 1 : index
      %c0_126 = arith.constant 0 : index
      %c0_127 = arith.constant 0 : index
      %196 = vector.load %arg8[%c1_125, %c0_126, %c0_127] : memref<4x8x128xbf16, #tpu.memory_space<vmem>>, vector<1x8x128xbf16>
      %197 = vector.shape_cast %196 : vector<1x8x128xbf16> to vector<8x128xbf16>
      %cst_128 = arith.constant dense<0.000000e+00> : vector<8x128xf32>
      %198 = tpu.matmul %195, %197, %cst_128 {dimension_numbers = #tpu.dot_dimension_numbers<[1], [0], [0], [1], [0, 0, 1, 1], [], []>} : vector<8x8xbf16>, vector<8x128xbf16>, vector<8x128xf32> -> vector<8x128xf32>
      %199 = arith.addf %187, %198 : vector<8x128xf32>
      %c2_129 = arith.constant 2 : index
      %c0_130 = arith.constant 0 : index
      %c0_131 = arith.constant 0 : index
      %200 = vector.load %arg12[%c2_129, %c0_130, %c0_131] : memref<4x8x1xf32, #tpu.memory_space<vmem>>, vector<1x8x1xf32>
      %201 = vector.shape_cast %200 : vector<1x8x1xf32> to vector<8x1xf32>
      %202 = tpu.reciprocal %201 {approx = true} : vector<8x1xf32> -> vector<8x1xf32>
      %c2_132 = arith.constant 2 : index
      %c0_133 = arith.constant 0 : index
      %c0_134 = arith.constant 0 : index
      %203 = vector.load %arg13[%c2_132, %c0_133, %c0_134] : memref<4x8x8xf32, #tpu.memory_space<vmem>>, vector<1x8x8xf32>
      %204 = vector.shape_cast %203 : vector<1x8x8xf32> to vector<8x8xf32>
      %205 = vector.broadcast %202 : vector<8x1xf32> to vector<8x8xf32>
      %206 = arith.mulf %204, %205 : vector<8x8xf32>
      %207 = arith.truncf %206 : vector<8x8xf32> to vector<8x8xbf16>
      %c2_135 = arith.constant 2 : index
      %c0_136 = arith.constant 0 : index
      %c0_137 = arith.constant 0 : index
      %208 = vector.load %arg8[%c2_135, %c0_136, %c0_137] : memref<4x8x128xbf16, #tpu.memory_space<vmem>>, vector<1x8x128xbf16>
      %209 = vector.shape_cast %208 : vector<1x8x128xbf16> to vector<8x128xbf16>
      %cst_138 = arith.constant dense<0.000000e+00> : vector<8x128xf32>
      %210 = tpu.matmul %207, %209, %cst_138 {dimension_numbers = #tpu.dot_dimension_numbers<[1], [0], [0], [1], [0, 0, 1, 1], [], []>} : vector<8x8xbf16>, vector<8x128xbf16>, vector<8x128xf32> -> vector<8x128xf32>
      %211 = arith.addf %199, %210 : vector<8x128xf32>
      %c3_139 = arith.constant 3 : index
      %c0_140 = arith.constant 0 : index
      %c0_141 = arith.constant 0 : index
      %212 = vector.load %arg12[%c3_139, %c0_140, %c0_141] : memref<4x8x1xf32, #tpu.memory_space<vmem>>, vector<1x8x1xf32>
      %213 = vector.shape_cast %212 : vector<1x8x1xf32> to vector<8x1xf32>
      %214 = tpu.reciprocal %213 {approx = true} : vector<8x1xf32> -> vector<8x1xf32>
      %c3_142 = arith.constant 3 : index
      %c0_143 = arith.constant 0 : index
      %c0_144 = arith.constant 0 : index
      %215 = vector.load %arg13[%c3_142, %c0_143, %c0_144] : memref<4x8x8xf32, #tpu.memory_space<vmem>>, vector<1x8x8xf32>
      %216 = vector.shape_cast %215 : vector<1x8x8xf32> to vector<8x8xf32>
      %217 = vector.broadcast %214 : vector<8x1xf32> to vector<8x8xf32>
      %218 = arith.mulf %216, %217 : vector<8x8xf32>
      %219 = arith.truncf %218 : vector<8x8xf32> to vector<8x8xbf16>
      %c3_145 = arith.constant 3 : index
      %c0_146 = arith.constant 0 : index
      %c0_147 = arith.constant 0 : index
      %220 = vector.load %arg8[%c3_145, %c0_146, %c0_147] : memref<4x8x128xbf16, #tpu.memory_space<vmem>>, vector<1x8x128xbf16>
      %221 = vector.shape_cast %220 : vector<1x8x128xbf16> to vector<8x128xbf16>
      %cst_148 = arith.constant dense<0.000000e+00> : vector<8x128xf32>
      %222 = tpu.matmul %219, %221, %cst_148 {dimension_numbers = #tpu.dot_dimension_numbers<[1], [0], [0], [1], [0, 0, 1, 1], [], []>} : vector<8x8xbf16>, vector<8x128xbf16>, vector<8x128xf32> -> vector<8x128xf32>
      %223 = arith.addf %211, %222 : vector<8x128xf32>
      %c0_149 = arith.constant 0 : index
      %c0_150 = arith.constant 0 : index
      %c0_151 = arith.constant 0 : index
      %224 = vector.load %arg9[%c0_149, %c0_150, %c0_151] : memref<1x8x128xf32, #tpu.memory_space<vmem>>, vector<1x8x128xf32>
      %225 = vector.shape_cast %224 : vector<1x8x128xf32> to vector<8x128xf32>
      %226 = vector.shape_cast %223 : vector<8x128xf32> to vector<1x8x128xf32>
      tpu.vector_store %arg9[%c0_149, %c0_150, %c0_151], %226 {strides = array<i32>} : memref<1x8x128xf32, #tpu.memory_space<vmem>>, vector<1x8x128xf32>,
    } else {
    }
    return
  }
  func.func @transform_0(%arg0: i32, %arg1: i32, %arg2: i32) -> (i32, i32, i32) {
    %c0_i32 = arith.constant 0 : i32
    %c0_i32_0 = arith.constant 0 : i32
    return %arg0, %arg1, %c0_i32 : i32, i32, i32
  }
  func.func @transform_1(%arg0: i32, %arg1: i32, %arg2: i32) -> (i32, i32, i32) {
    %c0_i32 = arith.constant 0 : i32
    %c0_i32_0 = arith.constant 0 : i32
    return %arg0, %arg2, %c0_i32 : i32, i32, i32
  }
  func.func @transform_2(%arg0: i32, %arg1: i32, %arg2: i32) -> (i32, i32) {
    %c0_i32 = arith.constant 0 : i32
    %c0_i32_0 = arith.constant 0 : i32
    %c0_i32_1 = arith.constant 0 : i32
    return %c0_i32, %c0_i32_0 : i32, i32
  }
  func.func @transform_3(%arg0: i32, %arg1: i32, %arg2: i32) -> (i32, i32) {
    %c0_i32 = arith.constant 0 : i32
    %c0_i32_0 = arith.constant 0 : i32
    %c0_i32_1 = arith.constant 0 : i32
    return %c0_i32, %c0_i32_0 : i32, i32
  }
  func.func @transform_4(%arg0: i32, %arg1: i32, %arg2: i32) -> (i32, i32) {
    %c0_i32 = arith.constant 0 : i32
    %c0_i32_0 = arith.constant 0 : i32
    %c0_i32_1 = arith.constant 0 : i32
    return %c0_i32, %c0_i32_0 : i32, i32
  }
  func.func @transform_5(%arg0: i32, %arg1: i32, %arg2: i32) -> (i32, i32, i32) {
    %c0_i32 = arith.constant 0 : i32
    %c0_i32_0 = arith.constant 0 : i32
    %c0_i32_1 = arith.constant 0 : i32
    %c0_i32_2 = arith.constant 0 : i32
    return %c0_i32, %c0_i32_0, %c0_i32_1 : i32, i32, i32
  }
  func.func @transform_6(%arg0: i32, %arg1: i32, %arg2: i32) -> (i32, i32, i32) {
    %c0_i32 = arith.constant 0 : i32
    %c0_i32_0 = arith.constant 0 : i32
    return %arg0, %arg1, %c0_i32 : i32, i32, i32
  }
}

</mosaic_0001>

<bundles_post_ra>
// kernel: tpu_custom_call.1
= control target key start
LH: loop header
LB: loop body
LE: loop exit
PB: predicated region body
PF: predicated region fallthrough
CT: control target
= control target key end

     0   :  { %s2029_s0 = inlined_call_operand.hbm [shape: f32[2,8,32], index: 0, kind: input, shape index: {}]   ;;  %s2030_s1 = inlined_call_operand.hbm [shape: f32[2,8,32], index: 1, kind: input, shape index: {}]   ;;  %s2031_s2 = inlined_call_operand.hbm [shape: bf16[32,32], index: 2, kind: input, shape index: {}]   ;;  %s2032_s3 = inlined_call_operand.hbm [shape: bf16[32,32], index: 3, kind: input, shape index: {}]   ;;  %s2033_s4 = inlined_call_operand.hbm [shape: bf16[32,32], index: 4, kind: input, shape index: {}]   ;;  %s2034_s5 = inlined_call_operand.hbm [shape: bf16[4,8,128], index: 5, kind: input, shape index: {}]   ;;  %s2035_s6 = inlined_call_operand.hbm [shape: f32[2,8,128], index: 6, kind: output, shape index: {}]  }
   0x1   :  { %2038 = sst [smem:[#allocation27_spill]] %s2031_s2 }
   0x2   :  { %2039 = sst [smem:[#allocation28_spill]] %s2032_s3 }
   0x3   :  { %2040 = sst [smem:[#allocation29_spill]] %s2033_s4 }
   0x4   :  { %2041 = sst [smem:[#allocation30_spill]] %s2034_s5 }
   0x5   :  { %11 = vsyncpa [#allocation7], 0 }
   0x6   :  { %13 = vsyncpa [#allocation7 + $0x1], 0 }
   0x7   :  { %14 = vsyncpa [#allocation10], 0 }
   0x8   :  { %16 = vsyncpa [#allocation10 + $0x1], 0 }
   0x9   :  { %17 = vsyncpa [#allocation13], 0 }
   0xa   :  { %18 = vsyncpa [#allocation16], 0 }
   0xb   :  { %19 = vsyncpa [#allocation8], 0 }
   0xc   :  { %21 = vsyncpa [#allocation8 + $0x1], 0  ;;  %s1704_s21 = smov 0   ;;  %s1706_s22 = smov 0  }
   0xd   :  { %s1708_s23 = smov 0   ;;  %s1710_s24 = smov 0  }
   0xe   :  { %s1712_s25 = smov 0   ;;  %s1714_s26 = smov 0  }
   0xf LB: > { %2042 = sst [smem:[#allocation24_spill]] %s1651_s25  ;;  %s1735_s27 = sadd.s32 4294967295, %s1655_s26   ;;  %s1655_s26 = sphi %s1714_s26, %s27_s26   ;;  %s1651_s25 = sphi %s1712_s25, %s2057_s25   ;;  %s1647_s24 = sphi %s1710_s24, %s2056_s24   ;;  %s1643_s23 = sphi %s1708_s23, %s2060_s23   ;;  %s1639_s22 = sphi %s1706_s22, %s2059_s22   ;;  %s1635_s21 = sphi %s1704_s21, %s2058_s21  }
  0x10   : > { %p1163_p0 = scmp.ge.s32.totalorder %s1655_s26, 1  ;;  %p69_p1 = scmp.eq.s32.totalorder %s1735_s27, 0 }
  0x11   : > { %p219_p2 = scmp.lt.s32.totalorder %s1655_s26, 3  ;;  %s2043_s2 = sld [smem:[#allocation27_spill]] }
  0x12   : > { %s1657_s8 = smov [#allocation11]   ;;  %p1168_p6 = scmp.ge.s32.totalorder %s1655_s26, 2 }
  0x13   : > { %p1743_p3 = pnand %p1163_p0, %p219_p2  ;;  %s232_s9 = sshll.u32 %s1657_s8, 4  ;;  %s233_s9 = int_to_ptr.vmem [resolvable:$true] %s232_s9 }
  0x14   : > { %s2046_s3 = sld [smem:[#allocation28_spill]]  ;;  %s1658_s14 = smov 64  }
  0x15   : > { %p1256_p4 = pneg %p1743_p3  ;;  %s1659_s15 = smov 4  }
  0x16   : > { %s1660_s16 = smov [#allocation12]   ;;  %s2047_s4 = sld [smem:[#allocation29_spill]] }
  0x17   : > { %s230_s30 = sshll.u32 %s2043_s2, 4  ;;  %p1751_p5 = pnand %p1256_p4, %p69_p1  ;;  %s231_s30 = int_to_ptr.hbm [resolvable:$true] %s230_s30 }
  0x18   : > { %s246_s17 = sshll.u32 %s1660_s16, 4  ;;  %s2048_s5 = sld [smem:[#allocation30_spill]]  ;;  %s247_s17 = int_to_ptr.vmem [resolvable:$true] %s246_s17 }
  0x19   : > { %1259 = dma.hbm_to_vmem [thread:$0]  (!%p1751_p5), %s231_s30, 256, %s233_s9, [#allocation10], %s1658_s14, %s1658_s14, %s1659_s15  }
  0x1a   : > { %s244_s13 = sshll.u32 %s2046_s3, 4  ;;  %s1661_s8 = smov [#allocation14]   ;;  %s245_s13 = int_to_ptr.hbm [resolvable:$true] %s244_s13 }
  0x1b   : > { %1262 = dma.hbm_to_vmem [thread:$0]  (!%p1751_p5), %s245_s13, 256, %s247_s17, [#allocation13], %s1658_s14, %s1658_s14, %s1659_s15  }
  0x1c   : > { %s258_s20 = sshll.u32 %s2047_s4, 4  ;;  %s260_s9 = sshll.u32 %s1661_s8, 4  ;;  %s259_s20 = int_to_ptr.hbm [resolvable:$true] %s258_s20  ;;  %s261_s9 = int_to_ptr.vmem [resolvable:$true] %s260_s9 }
  0x1d   : > { %1265 = dma.hbm_to_vmem [thread:$0]  (!%p1751_p5), %s259_s20, 256, %s261_s9, [#allocation13], %s1658_s14, %s1658_s14, %s1659_s15  }
  0x1e   : > { %s272_s30 = sshll.u32 %s2048_s5, 4  ;;  %s1662_s11 = smov [#allocation15]   ;;  %s273_s30 = int_to_ptr.hbm [resolvable:$true] %s272_s30 }
  0x1f   : > { %s274_s12 = sshll.u32 %s1662_s11, 4  ;;  %s1162_s13 = sadd.s32 4294967294, %s1655_s26   ;;  %s275_s12 = int_to_ptr.vmem [resolvable:$true] %s274_s12 }
  0x20   : > { %1268 = dma.hbm_to_vmem [thread:$0]  (!%p1751_p5), %s273_s30, 256, %s275_s12, [#allocation16], %s1658_s14, %s1658_s14, %s1659_s15  }
  0x21   : > { %s46_s16 = sadd.s32 1, %s1651_s25  ;;  %s55_s17 = sadd.s32 1, %s1643_s23 }
  0x22   : > { %p48_p7 = scmp.ge.s32.totalorder %s46_s16, 2  ;;  %p62_p8 = scmp.ne.s32.totalorder %s1643_s23, %s1639_s22 }
  0x23   : > { %p63_p9 = scmp.eq.s32.totalorder %s1655_s26, 0  ;;  %p68_p11 = scmp.ne.s32.totalorder %s1639_s22, %s1635_s21 }
  0x24   : > { %s2062_s16 = smov (%p48_p7, %s46_s16), 0  ;;  %p206_p12 = scmp.eq.s32.totalorder %s1735_s27, 1 }
  0x25   : > { %2049 = sst [smem:[#allocation25_spill]] %s2062_s16  ;;  %p1781_p10 = por %p63_p9, %p62_p8 }
  0x26   : > { %s50_s10 = ssub.s32 %s1651_s25, %s2062_s16  ;;  %p1792_p0 = por %p69_p1, %p68_p11 }
  0x27   : > { %p53_p13 = scmp.eq.s32.totalorder %s50_s10, 0  ;;  %p1796_p2 = por %p206_p12, %p62_p8 }
  0x28   : > { %p212_p4 = scmp.eq.s32.totalorder %s1162_s13, 1  ;;  %p1284_p7 = scmp.lt.s32.totalorder %s1655_s26, 2 }
  0x29   : > { %s1801_s19 = scalar_select %p53_p13, %s1643_s23, %s55_s17  }
  0x2a   : > { %p1803_p5 = por %p212_p4, %p68_p11  ;;  %s288_s28 = sand.u32 1, %s1643_s23  }
  0x2b   : > { %2053 = sst [smem:[#allocation26_spill]] %s1801_s19  ;;  %s1170_s29 = sshll.u32 %s1651_s25, 3 }
  0x2c   : > { %s1169_s30 = sshll.u32 %s288_s28, 3  ;;  %s297_s11 = scalar_lea.hbm %s2029_s0, %s1170_s29 }
  0x2d   : > { %s299_s12 = sshll.u32 %s297_s11, 4  ;;  %s292_s10 = scalar_lea.vmem [#allocation6], %s1169_s30  ;;  %s300_s12 = int_to_ptr.hbm [resolvable:$true] %s299_s12 }
  0x2e   : > { %s301_s2 = sshll.u32 %s292_s10, 4  ;;  %p1270_p8 = pnand %p1284_p7, %p1781_p10  ;;  %s302_s2 = int_to_ptr.vmem [resolvable:$true] %s301_s2 }
  0x2f   : > { %s317_s3 = scalar_lea.hbm %s2030_s1, %s1170_s29  ;;  %s308_s4 = sand.u32 1, %s1655_s26  }
  0x30   : > { %s289_s5 = scalar_lea.sflag [#allocation7], %s288_s28  ;;  %s319_s16 = sshll.u32 %s317_s3, 4  ;;  %s320_s16 = int_to_ptr.hbm [resolvable:$true] %s319_s16 }
  0x31   : > { %1272 = dma.hbm_to_vmem [thread:$0]  (!%p1270_p8), %s300_s12, 128, %s302_s2, %s289_s5  }
  0x32   : > { %s312_s25 = scalar_lea.vmem [#allocation9], %s1169_s30  ;;  %s309_s8 = scalar_lea.sflag [#allocation10], %s308_s4 }
  0x33   : > { %s321_s19 = sshll.u32 %s312_s25, 4  ;;  %330 = sbr.rel (%p1743_p3) target bundleno = 1119 (0x45f), region = 44  ;;  %s322_s19 = int_to_ptr.vmem [resolvable:$true] %s321_s19 }
  0x34   : > { %1275 = dma.hbm_to_vmem [thread:$0]  (!%p1270_p8), %s320_s16, 128, %s322_s19, %s309_s8  }
  0x35   : > { %s1822_s18 = sand.u32 (!%p1743_p3), 1, %s1639_s22  }
  0x36   : > { %s1825_s29 = sshll.u32 (!%p1743_p3), %s1822_s18, 3  ;;  %s333_s2 = scalar_lea.sflag (!%p1743_p3), [#allocation7], %s1822_s18 }
  0x37   : > { %s336_s3 = scalar_lea.vmem (!%p1743_p3), [#allocation6], %s1825_s29 }
  0x38   : > { %1610 = dma.done.wait (%p1792_p0), %s333_s2, 128  }
  0x39   : > { %1612 = vsyncadd (%p1792_p0), %s333_s2, 4294967168  ;;  %s342_s4 = sand.u32 1, %s1735_s27   ;;  %s346_s25 = scalar_lea.vmem [#allocation9], %s1825_s29 }
  0x3a   : > { %s343_s5 = scalar_lea.sflag [#allocation10], %s342_s4 }
  0x3b   : > { %1614 = dma.done.wait (%p1792_p0), %s343_s5, 128  }
  0x3c   : > { %1616 = vsyncadd (%p1792_p0), %s343_s5, 4294967168 }
  0x3d   : > { %1618 = dma.done.wait (%p69_p1), [#allocation10], 256  }
  0x3e   : > { %1620 = vsyncadd (%p69_p1), [#allocation10], 4294967040 }
  0x3f   : > { %1622 = dma.done.wait (%p69_p1), [#allocation13], 512  }
  0x40   : > { %1624 = vsyncadd (%p69_p1), [#allocation13], 4294966784 }
  0x41   : > { %1626 = dma.done.wait (%p69_p1), [#allocation16], 256  }
  0x42   : > { %1628 = vsyncadd (%p69_p1), [#allocation16], 4294967040  ;;  %v1229_v0 = vld [vmem:[#allocation11 + $0x8] sm:$0xff]  ;;  %v1231_v1 = vld [vmem:[#allocation12 + $0x8] sm:$0xff]  ;;  %vm424_vm0 = vcmask 261120   ;;  %vm454_vm1 = vcmask 64512  }
  0x43   : > { %v1228_v2 = vld [vmem:[#allocation11] sm:$0xff]  ;;  %434 = vmatpush.bf16.msra.mxu0 %v1229_v0  ;;  %487 = vmatpush.bf16.msra.mxu1 %v1231_v1  ;;  %v1230_v3 = vld [vmem:[#allocation12] sm:$0xff]  ;;  %vm443_vm2 = vcmask 257024   ;;  %s1663_s27 = smov 104   ;;  %s1664_s7 = smov 120   ;;  %v1233_v28 = vld [vmem:[#allocation14 + $0x8] sm:$0xff] }
  0x44   : > { %v406_v4 = vld [vmem:[%s336_s3] sm:$0xff]  ;;  %v459_v5 = vld [vmem:[%s346_s25] sm:$0xff]  ;;  %s1665_s16 = smov 112   ;;  %517 = vmatpush.bf16.msra.mxu2 %v1233_v28  ;;  %vm445_vm3 = vcmask 7168   ;;  %v1666_v43 = vmov -inf   ;;  %v1667_v44 = vmov 0.0  }
  0x45   : > { %v407_v6 = vpack.c.bf16 %v406_v4, %v406_v4  ;;  %v460_v7 = vpack.c.bf16 %v459_v5, %v459_v5  ;;  %v1232_v33 = vld [vmem:[#allocation14] sm:$0xff]  ;;  %446 = vst.msk [vmem:[#allocation3] sm:$0xff] %vm445_vm3, %v1666_v43  ;;  %v1668_v45 = vmov 0   ;;  %vm576_vm4 = vcmask 1043456   ;;  %s1225_s14 = sshll.u32 %s1647_s24, 3  ;;  %s400_s9 = scalar_lea.vmem [#allocation17], %s1825_s29 }
  0x46   : > { %447 = vst.msk [vmem:[#allocation3 + $0x8] sm:$0xff] %vm445_vm3, %v1666_v43  ;;  %1351 = vset.pattern.permute.xlu2 %v1668_v45  ;;  %1350 = vset.pattern.permute.xlu0 %v1668_v45  ;;  %s1011_s30 = scalar_lea.hbm %s2035_s6, %s1225_s14  ;;  %s1013_s11 = sshll.u32 %s400_s9, 4  ;;  %s1014_s11 = int_to_ptr.vmem [resolvable:$true] %s1013_s11 }
  0x47   : > { %435 = vmatpush.bf16.msra.mxu0 %v1228_v2  ;;  %488 = vmatpush.bf16.msra.mxu1 %v1230_v3  ;;  %448 = vst.msk [vmem:[#allocation3 + $0x10] sm:$0xff] %vm445_vm3, %v1666_v43  ;;  %s1015_s12 = sshll.u32 %s1011_s30, 4  ;;  %s1000_s10 = scalar_lea.sflag [#allocation8], %s1822_s18  ;;  %s1016_s12 = int_to_ptr.hbm [resolvable:$true] %s1015_s12 }
  0x48   : > { %518 = vmatpush.bf16.msra.mxu2 %v1232_v33  ;;  %449 = vst.msk [vmem:[#allocation3 + $0x18] sm:$0xff] %vm445_vm3, %v1666_v43  ;;  %1352 = vset.pattern.permute.xlu1 %v1668_v45  ;;  %s1571_s13 = sshra.s32 %s1016_s12, 4  ;;  %s1577_s2 = scalar_lea.hbm %s2035_s6, 16  ;;  %s1572_s13 = int_to_ptr.hbm [resolvable:$true] %s1571_s13 }
  0x49   : > { %450 = vst.msk [vmem:[#allocation4] sm:$0xff] %vm445_vm3, %v1667_v44  ;;  %s1573_s17 = scalar_lea.hbm %s1572_s13, 8  ;;  %p1578_p10 = scmp.lt.s32.totalorder %s1572_s13, %s2035_s6 }
  0x4a   : > { %1189 = vmatmul.msk.bf16.vlgmr.msra.gmra.mxu0 %vm424_vm0, %v407_v6  ;;  %1198 = vmatmul.msk.bf16.vlgmr.msra.gmra.mxu1 %vm424_vm0, %v460_v7  ;;  %451 = vst.msk [vmem:[#allocation4 + $0x8] sm:$0xff] %vm445_vm3, %v1667_v44  ;;  %p1574_p1 = scmp.ne.s32.totalorder %s1572_s13, %s1573_s17  ;;  %p1579_p11 = scmp.lt.s32.totalorder %s1577_s2, %s1573_s17 }
  0x4b   : > { %1207 = vmatmul.msk.bf16.vlgmr.msra.gmra.mxu2 %vm424_vm0, %v460_v7  ;;  %452 = vst.msk [vmem:[#allocation4 + $0x10] sm:$0xff] %vm445_vm3, %v1667_v44 }
  0x4c   : > { %453 = vst.msk [vmem:[#allocation4 + $0x18] sm:$0xff] %vm445_vm3, %v1667_v44  ;;  %v1892_v49 = vld [vmem:[#allocation3] sm:$0xff]  ;;  %p1575_p3 = pnand %p1574_p1, %p1796_p2  ;;  %p1580_p12 = por %p1579_p11, %p1578_p10 }
  0x4d   : > { %455 = vst.msk [vmem:[#allocation5] sm:$0xff] %vm454_vm1, %v1667_v44  ;;  %v1918_v4 = vld [vmem:[#allocation3 + $0x8] sm:$0xff] }
  0x4e   : > { %456 = vst.msk [vmem:[#allocation5 + $0x8] sm:$0xff] %vm454_vm1, %v1667_v44  ;;  %p1576_p9 = pneg %p1575_p3 }
  0x4f   : > { %457 = vst.msk [vmem:[#allocation5 + $0x10] sm:$0xff] %vm454_vm1, %v1667_v44 }
  0x50   : > { %458 = vst.msk [vmem:[#allocation5 + $0x18] sm:$0xff] %vm454_vm1, %v1667_v44  ;;  %p1581_p13 = pnand %p1580_p12, %p1576_p9 }
  0xc7   : > { %v437_v8 = vpop.f32.mrf.mxu0  ;;  %v490_v9 = vpop.f32.mrf.mxu1 }
  0xc8   : > { %v441_v10 = vmul.f32 0.35355338, %v437_v8  ;;  %v494_v11 = vpack.c.bf16 %v490_v9, %v490_v9  ;;  %v1928_v8 = vld [vmem:[#allocation3 + $0x10] sm:$0xff] }
  0xca   : > { %v442_v12 = vpack.c.bf16 %v441_v10, %v441_v10  ;;  %v610_v13 = vunpack.c.l.b16 %v494_v11  ;;  %v531_v14 = vsel %vm454_vm1, %v494_v11, 0 }
  0xcb   : > { %540 = vmatpush.bf16.xpose.msra.mxu3 %v531_v14 }
  0xcc   : > { %444 = vst.msk [vmem:[#allocation2] sm:$0xf] %vm443_vm2, %v442_v12  ;;  %v611_v15 = vpack.c.b16 %v610_v13, %v610_v13  ;;  %v813_v12 = vld [vmem:[#allocation3 + $0x18] sm:$0xff] }
  0xce   : > { %789 = vrot.lane.b32.xlu1 %v611_v15, %s1663_s27  ;;  %612 = vrot.lane.b32.xlu0 %v611_v15, %s1664_s7  ;;  %v520_v58 = vpop.f32.mrf.mxu2 }
  0xcf   : > { %v492_v16 = vpop.f32.mrf.mxu1  ;;  %v439_v17 = vpop.f32.mrf.mxu0  ;;  %v524_v59 = vpack.c.bf16 %v520_v58, %v520_v58 }
  0xd1   : > { %v662_v61 = vunpack.c.l.b16 %v524_v59  ;;  %v578_v3 = vsel %vm576_vm4, %v524_v59, 0 }
  0xd2   : > { %587 = vmatpush.bf16.msrb.mxu0 %v578_v3  ;;  %v830_v3 = vld [vmem:[#allocation4 + $0x18] sm:$0xff] }
  0xd3   : > { %v603_v18 = vld [vmem:[#allocation2] sm:$0xf]  ;;  %v663_v63 = vpack.c.b16 %v662_v61, %v662_v61 }
  0xd4   : > { %v525_v19 = vld [vmem:[#allocation2] sm:$0xf]  ;;  %v605_v21 = vunpack.c.l.b16 %v603_v18 }
  0xd5   : > { %v783_v20 = vld [vmem:[#allocation2] sm:$0xf]  ;;  %1208 = vmatmul.msk.bf16.vlgmr.msra.gmra.mxu3 %vm454_vm1, %v525_v19 }
  0xd6   : > { %v785_v22 = vunpack.c.l.b16 %v783_v20  ;;  %702 = vrot.lane.b32.xlu1 %v611_v15, %s1665_s16  ;;  %v606_v23 = vpack.c.b16 %v605_v21, %v605_v21  ;;  %v696_v25 = vld [vmem:[#allocation2] sm:$0xf]  ;;  %v522_v2 = vpop.f32.mrf.mxu2 }
  0xd7   : > { %v698_v26 = vunpack.c.l.b16 %v696_v25 }
  0xd8   : > { %v786_v24 = vpack.c.b16 %v785_v22, %v785_v22  ;;  %607 = vrot.lane.b32.xlu0 %v606_v23, %s1664_s7 }
  0xd9   : > { %v699_v27 = vpack.c.b16 %v698_v26, %v698_v26 }
  0xda   : > { %787 = vrot.lane.b32.xlu2 %v786_v24, %s1663_s27 }
  0xe2   : > { %700 = vrot.lane.b32.xlu2 %v699_v27, %s1665_s16 }
 0x134   : > { %v788_v34 = vpop.permute.xlu2 %787 }
 0x13c   : > { %v701_v38 = vpop.permute.xlu2 %700 }
 0x140   : > { %v790_v29 = vpop.permute.xlu1 %789  ;;  %v613_v30 = vpop.permute.xlu0 %612 }
 0x141   : > { %v795_v31 = vsel %vm454_vm1, %v790_v29, 0  ;;  %v618_v32 = vsel %vm454_vm1, %v613_v30, 0 }
 0x142   : > { %627 = vmatpush.bf16.xpose.msrb.mxu1 %v618_v32 }
 0x148   : > { %v703_v35 = vpop.permute.xlu1 %702 }
 0x149   : > { %v708_v36 = vsel %vm454_vm1, %v703_v35, 0 }
 0x14a   : > { %804 = vmatpush.bf16.xpose.msra.mxu1 %v795_v31  ;;  %717 = vmatpush.bf16.xpose.msrb.mxu3 %v708_v36  ;;  %v608_v37 = vpop.permute.xlu0 %607 }
 0x14b   : > { %1211 = vmatmul.msk.bf16.vlgmr.msrb.gmra.mxu1 %vm454_vm1, %v608_v37 }
 0x151   : > { %1214 = vmatmul.msk.bf16.vlgmr.msrb.gmra.mxu3 %vm454_vm1, %v701_v38 }
 0x158   : > { %v1867_v39 = vpop.f32.mrf.mxu3 }
 0x159   : > { %v1209_v40 = vclamps-f32 %v1867_v39, 10000.0 }
 0x15b   : > { %v549_v41 = vsel %vm454_vm1, %v1209_v40, -inf  ;;  %1217 = vmatmul.msk.bf16.vlgmr.msra.gmra.mxu1 %vm454_vm1, %v788_v34 }
 0x15c   : > { %550 = vmax.xlane.f32.xlu1 %v549_v41 }
 0x160   : > { %v544_v42 = vpop.f32.mrf.mxu3 }
 0x175   : > { %664 = vrot.lane.b32.xlu1 %v663_v63, %s1664_s7 }
 0x1c8   : > { %v1886_v46 = vpop.f32.mrf.mxu1 }
 0x1c9   : > { %v1212_v47 = vclamps-f32 %v1886_v46, 10000.0 }
 0x1cb   : > { %v637_v48 = vsel %vm454_vm1, %v1212_v47, -inf }
 0x1cc   : > { %638 = vmax.xlane.f32.xlu0 %v637_v48 }
 0x1cf   : > { %v551_v50 = vpop.xlane.xlu1 %550 }
 0x1d0   : > { %v1895_v51 = vmax.f32 %v1892_v49, %v551_v50  ;;  %v631_v52 = vpop.f32.mrf.mxu1 }
 0x1d2   : > { %v553_v53 = vsub.f32 %v1892_v49, %v1895_v51  ;;  %602 = vst.msk [vmem:[#allocation3] sm:$0xff] %vm445_vm3, %v1895_v51 }
 0x1d4   : > { %v1901_v54 = vpop.f32.mrf.mxu3  ;;  %v554_v39 = vmul.f32 1.442695, %v553_v53 }
 0x1d5   : > { %v1215_v55 = vclamps-f32 %v1901_v54, 10000.0 }
 0x1d7   : > { %v727_v56 = vsel %vm454_vm1, %v1215_v55, -inf }
 0x1d8   : > { %v1907_v57 = vpop.f32.mrf.mxu1  ;;  %728 = vmax.xlane.f32.xlu2 %v727_v56 }
 0x1d9   : > { %v1218_v60 = vclamps-f32 %v1907_v57, 10000.0 }
 0x1db   : > { %v814_v0 = vsel %vm454_vm1, %v1218_v60, -inf }
 0x1dc   : > { %v721_v62 = vpop.f32.mrf.mxu3 }
 0x1dd   : > { %v653_v62 = vld [vmem:[#allocation4 + $0x8] sm:$0xff] }
 0x1e0   : > { %v808_v1 = vpop.f32.mrf.mxu1  ;;  %815 = vmax.xlane.f32.xlu2 %v814_v0 }
 0x1e7   : > { %v665_v18 = vpop.permute.xlu1 %664 }
 0x1e8   : > { %v670_v19 = vsel %vm576_vm4, %v665_v18, 0 }
 0x1e9   : > { %679 = vmatpush.bf16.msrb.mxu2 %v670_v19 }
 0x1f8   : > { %558 = vperm.xlu2 %1351, %v1895_v51  }
 0x200   : > { %838 = vrot.lane.b32.xlu2 %v663_v63, %s1663_s27 }
 0x208   : > { %751 = vrot.lane.b32.xlu2 %v663_v63, %s1665_s16 }
 0x23f   : > { %v639_v5 = vpop.xlane.xlu0 %638 }
 0x240   : > { %v1921_v6 = vmax.f32 %v1918_v4, %v639_v5 }
 0x242   : > { %v641_v7 = vsub.f32 %v1918_v4, %v1921_v6  ;;  %695 = vst.msk [vmem:[#allocation3 + $0x8] sm:$0xff] %vm445_vm3, %v1921_v6  ;;  %646 = vperm.xlu0 %1350, %v1921_v6  }
 0x244   : > { %v642_v54 = vmul.f32 1.442695, %v641_v7 }
 0x24b   : > { %v729_v9 = vpop.xlane.xlu2 %728 }
 0x24c   : > { %v1931_v10 = vmax.f32 %v1928_v8, %v729_v9  ;;  %v743_v9 = vld [vmem:[#allocation4 + $0x10] sm:$0xff] }
 0x24e   : > { %v731_v11 = vsub.f32 %v1928_v8, %v1931_v10  ;;  %782 = vst.msk [vmem:[#allocation3 + $0x10] sm:$0xff] %vm445_vm3, %v1931_v10 }
 0x250   : > { %v732_v56 = vmul.f32 1.442695, %v731_v11 }
 0x253   : > { %v816_v13 = vpop.xlane.xlu2 %815 }
 0x254   : > { %v817_v14 = vmax.f32 %v813_v12, %v816_v13  ;;  %v883_v13 = vld [vmem:[#allocation15] sm:$0xf] }
 0x256   : > { %869 = vst.msk [vmem:[#allocation3 + $0x18] sm:$0xff] %vm445_vm3, %v817_v14  ;;  %823 = vperm.xlu1 %1352, %v817_v14   ;;  %v818_v27 = vsub.f32 %v813_v12, %v817_v14 }
 0x258   : > { %v819_v28 = vmul.f32 1.442695, %v818_v27 }
 0x25b   : > { %v559_v15 = vpop.permute.xlu2 %558 }
 0x25c   : > { %v561_v16 = vsub.f32 %v1209_v40, %v559_v15  ;;  %v919_v15 = vsel %vm576_vm4, %v883_v13, 0 }
 0x25e   : > { %v562_v17 = vmul.f32 1.442695, %v561_v16  ;;  %736 = vperm.xlu1 %1352, %v1931_v10  }
 0x260   : > { %1353 = vpow2.f32 %v562_v17  ;;  %v860_v17 = vld [vmem:[#allocation5 + $0x18] sm:$0xff] }
 0x261   : > { %1355 = vpow2.f32 %v819_v28 }
 0x263   : > { %v839_v20 = vpop.permute.xlu2 %838 }
 0x264   : > { %v844_v21 = vsel %vm576_vm4, %v839_v20, 0 }
 0x265   : > { %853 = vmatpush.bf16.msra.mxu2 %v844_v21 }
 0x266   : > { %v1354_v22 = vpop.eup %1353 }
 0x267   : > { %v566_v23 = vsel %vm454_vm1, %v1354_v22, 0.0  ;;  %v572_v24 = vpack.c.bf16 %v1354_v22, %v1354_v22  ;;  %v1946_v29 = vpop.eup %1355 }
 0x268   : > { %567 = vadd.xlane.f32.xlu2 %v566_v23  ;;  %v831_v6 = vmul.f32 %v1946_v29, %v830_v3 }
 0x269   : > { %1210 = vmatmul.msk.bf16.vlgmr.msrb.gmra.mxu0 %vm454_vm1, %v572_v24 }
 0x26b   : > { %v752_v25 = vpop.permute.xlu2 %751 }
 0x26c   : > { %v757_v26 = vsel %vm576_vm4, %v752_v25, 0  ;;  %v686_v25 = vld [vmem:[#allocation5 + $0x8] sm:$0xff] }
 0x26d   : > { %766 = vmatpush.bf16.msra.mxu0 %v757_v26 }
 0x271   : > { %928 = vmatpush.bf16.msrb.mxu0 %v919_v15 }
 0x280   : > { %863 = vperm.xlu2 %1351, %v1946_v29  }
 0x2b4   : > { %v647_v30 = vpop.permute.xlu0 %646 }
 0x2b5   : > { %v649_v31 = vsub.f32 %v1212_v47, %v647_v30  ;;  %v564_v47 = vld [vmem:[#allocation4] sm:$0xff] }
 0x2b6   : > { %v593_v30 = vld [vmem:[#allocation5] sm:$0xff] }
 0x2b7   : > { %v650_v32 = vmul.f32 1.442695, %v649_v31 }
 0x2b9   : > { %1357 = vpow2.f32 %v650_v32 }
 0x2bf   : > { %v1358_v33 = vpop.eup %1357 }
 0x2c0   : > { %v655_v34 = vsel %vm454_vm1, %v1358_v33, 0.0  ;;  %v660_v35 = vpack.c.bf16 %v1358_v33, %v1358_v33 }
 0x2c1   : > { %656 = vadd.xlane.f32.xlu0 %v655_v34 }
 0x2c2   : > { %1213 = vmatmul.msk.bf16.vlgmr.msrb.gmra.mxu2 %vm454_vm1, %v660_v35 }
 0x2c8   : > { %v824_v36 = vpop.permute.xlu1 %823 }
 0x2c9   : > { %v826_v37 = vsub.f32 %v1218_v60, %v824_v36  ;;  %v773_v36 = vld [vmem:[#allocation5 + $0x10] sm:$0xff] }
 0x2cb   : > { %v827_v38 = vmul.f32 1.442695, %v826_v37 }
 0x2cd   : > { %1359 = vpow2.f32 %v827_v38 }
 0x2ce   : > { %1361 = vpow2.f32 %v554_v39 }
 0x2d0   : > { %v737_v40 = vpop.permute.xlu1 %736 }
 0x2d1   : > { %v739_v41 = vsub.f32 %v1215_v55, %v737_v40 }
 0x2d3   : > { %v1360_v42 = vpop.eup %1359  ;;  %v740_v43 = vmul.f32 1.442695, %v739_v41 }
 0x2d4   : > { %v837_v44 = vpack.c.bf16 %v1360_v42, %v1360_v42  ;;  %v832_v45 = vsel %vm454_vm1, %v1360_v42, 0.0  ;;  %v1362_v46 = vpop.eup %1361 }
 0x2d5   : > { %1363 = vpow2.f32 %v740_v43  ;;  %833 = vadd.xlane.f32.xlu1 %v832_v45  ;;  %v565_v48 = vmul.f32 %v1362_v46, %v564_v47 }
 0x2d6   : > { %1219 = vmatmul.msk.bf16.vlgmr.msra.gmra.mxu2 %vm454_vm1, %v837_v44  ;;  %1365 = vpow2.f32 %v642_v54  ;;  %v977_v44 = vld [vmem:[#allocation15 + $0xc] sm:$0xf] }
 0x2d7   : > { %1367 = vpow2.f32 %v732_v56  ;;  %v982_v45 = vsel %vm576_vm4, %v977_v44, 0 }
 0x2d8   : > { %991 = vmatpush.bf16.msrb.mxu2 %v982_v45 }
 0x2db   : > { %v1364_v49 = vpop.eup %1363  ;;  %v568_v50 = vpop.xlane.xlu2 %567 }
 0x2dc   : > { %v750_v51 = vpack.c.bf16 %v1364_v49, %v1364_v49  ;;  %v569_v52 = vadd.f32 %v568_v50, %v565_v48  ;;  %v745_v53 = vsel %vm454_vm1, %v1364_v49, 0.0  ;;  %v1366_v57 = vpop.eup %1365  ;;  %v945_v48 = vld [vmem:[#allocation15 + $0x8] sm:$0xf] }
 0x2dd   : > { %746 = vadd.xlane.f32.xlu0 %v745_v53  ;;  %v1368_v60 = vpop.eup %1367  ;;  %v654_v63 = vmul.f32 %v1366_v57, %v653_v62  ;;  %v950_v49 = vsel %vm576_vm4, %v945_v48, 0 }
 0x2de   : > { %571 = vst.msk [vmem:[#allocation4] sm:$0xff] %vm445_vm3, %v569_v52  ;;  %1216 = vmatmul.msk.bf16.vlgmr.msra.gmra.mxu0 %vm454_vm1, %v750_v51  ;;  %v744_v11 = vmul.f32 %v1368_v60, %v743_v9  ;;  %959 = vmatpush.bf16.msrb.mxu1 %v950_v49 }
 0x2e3   : > { %v864_v18 = vpop.permute.xlu2 %863 }
 0x2e4   : > { %v866_v19 = vmul.f32 %v864_v18, %v860_v17 }
 0x2e5   : > { %v873_v59 = vld [vmem:[#allocation4] sm:$0xff] }
 0x2e6   : > { %v1968_v55 = vpop.f32.mrf.mxu0  ;;  %1369 = vrcp.f32 %v873_v59 }
 0x2ec   : > { %v1370_v61 = vpop.eup %1369 }
 0x2ee   : > { %689 = vperm.xlu1 %1352, %v1366_v57   ;;  %v591_v58 = vpop.f32.mrf.mxu0 }
 0x2f1   : > { %596 = vperm.xlu0 %1350, %v1362_v46   ;;  %v895_v46 = vld [vmem:[#allocation15 + $0x4] sm:$0xf] }
 0x2f2   : > { %v900_v47 = vsel %vm576_vm4, %v895_v46, 0 }
 0x2f3   : > { %909 = vmatpush.bf16.msra.mxu3 %v900_v47 }
 0x2f6   : > { %776 = vperm.xlu1 %1352, %v1368_v60  }
 0x2fe   : > { %878 = vperm.xlu1 %1352, %v1370_v61  }
 0x334   : > { %v657_v0 = vpop.xlane.xlu0 %656 }
 0x335   : > { %v658_v1 = vadd.f32 %v657_v0, %v654_v63 }
 0x337   : > { %659 = vst.msk [vmem:[#allocation4 + $0x8] sm:$0xff] %vm445_vm3, %v658_v1 }
 0x33e   : > { %v884_v2 = vld [vmem:[#allocation4 + $0x8] sm:$0xff] }
 0x33f   : > { %1371 = vrcp.f32 %v884_v2 }
 0x345   : > { %v1372_v4 = vpop.eup %1371  ;;  %v681_v5 = vpop.f32.mrf.mxu2 }
 0x346   : > { %889 = vperm.xlu0 %1350, %v1372_v4  }
 0x348   : > { %v834_v7 = vpop.xlane.xlu1 %833 }
 0x349   : > { %v835_v8 = vadd.f32 %v834_v7, %v831_v6 }
 0x34b   : > { %836 = vst.msk [vmem:[#allocation4 + $0x18] sm:$0xff] %vm445_vm3, %v835_v8 }
 0x34d   : > { %v683_v10 = vpop.f32.mrf.mxu2 }
 0x350   : > { %v747_v12 = vpop.xlane.xlu0 %746 }
 0x351   : > { %v748_v14 = vadd.f32 %v747_v12, %v744_v11 }
 0x352   : > { %v966_v16 = vld [vmem:[#allocation4 + $0x18] sm:$0xff] }
 0x353   : > { %749 = vst.msk [vmem:[#allocation4 + $0x10] sm:$0xff] %vm445_vm3, %v748_v14  ;;  %1373 = vrcp.f32 %v966_v16 }
 0x359   : > { %v1374_v20 = vpop.eup %1373  ;;  %v855_v21 = vpop.f32.mrf.mxu2 }
 0x35a   : > { %v867_v22 = vadd.f32 %v866_v19, %v855_v21  ;;  %971 = vperm.xlu2 %1351, %v1374_v20   ;;  %v934_v23 = vld [vmem:[#allocation4 + $0x10] sm:$0xff] }
 0x35b   : > { %v768_v24 = vpop.f32.mrf.mxu0  ;;  %1375 = vrcp.f32 %v934_v23 }
 0x35c   : > { %868 = vst.msk [vmem:[#allocation5 + $0x18] sm:$0xff] %vm454_vm1, %v867_v22 }
 0x360   : > { %v690_v26 = vpop.permute.xlu1 %689 }
 0x361   : > { %v1376_v27 = vpop.eup %1375  ;;  %v692_v28 = vmul.f32 %v690_v26, %v686_v25  ;;  %v857_v29 = vpop.f32.mrf.mxu2 }
 0x362   : > { %939 = vperm.xlu0 %1350, %v1376_v27  }
 0x363   : > { %v693_v31 = vadd.f32 %v692_v28, %v681_v5  ;;  %v597_v32 = vpop.permute.xlu0 %596  ;;  %v770_v33 = vpop.f32.mrf.mxu0  ;;  %v968_v50 = vld [vmem:[#allocation5 + $0x18] sm:$0xff] }
 0x364   : > { %v599_v34 = vmul.f32 %v597_v32, %v593_v30 }
 0x365   : > { %694 = vst.msk [vmem:[#allocation5 + $0x8] sm:$0xff] %vm454_vm1, %v693_v31 }
 0x366   : > { %v600_v35 = vadd.f32 %v599_v34, %v1968_v55 }
 0x368   : > { %601 = vst.msk [vmem:[#allocation5] sm:$0xff] %vm454_vm1, %v600_v35  ;;  %v777_v37 = vpop.permute.xlu1 %776 }
 0x369   : > { %v779_v38 = vmul.f32 %v777_v37, %v773_v36 }
 0x36b   : > { %v780_v39 = vadd.f32 %v779_v38, %v768_v24 }
 0x36c   : > { %v886_v55 = vld [vmem:[#allocation5 + $0x8] sm:$0xff] }
 0x36d   : > { %781 = vst.msk [vmem:[#allocation5 + $0x10] sm:$0xff] %vm454_vm1, %v780_v39 }
 0x36f   : > { %v875_v40 = vld [vmem:[#allocation5] sm:$0xff] }
 0x370   : > { %v879_v41 = vpop.permute.xlu1 %878 }
 0x371   : > { %v881_v42 = vmul.f32 %v879_v41, %v875_v40 }
 0x373   : > { %v882_v43 = vpack.c.bf16 %v881_v42, %v881_v42 }
 0x374   : > { %v936_v59 = vld [vmem:[#allocation5 + $0x10] sm:$0xff] }
 0x375   : > { %1221 = vmatmul.msk.bf16.vlgmr.msrb.gmra.mxu0 %vm454_vm1, %v882_v43 }
 0x3b4   : > { %v972_v51 = vpop.permute.xlu2 %971 }
 0x3b5   : > { %v974_v52 = vmul.f32 %v972_v51, %v968_v50 }
 0x3b7   : > { %v975_v53 = vpack.c.bf16 %v974_v52, %v974_v52 }
 0x3b8   : > { %v890_v54 = vpop.permute.xlu0 %889 }
 0x3b9   : > { %v892_v56 = vmul.f32 %v890_v54, %v886_v55  ;;  %1223 = vmatmul.msk.bf16.vlgmr.msrb.gmra.mxu2 %vm454_vm1, %v975_v53 }
 0x3bb   : > { %v893_v57 = vpack.c.bf16 %v892_v56, %v892_v56 }
 0x3bd   : > { %1220 = vmatmul.msk.bf16.vlgmr.msra.gmra.mxu3 %vm454_vm1, %v893_v57 }
 0x3d4   : > { %v940_v58 = vpop.permute.xlu0 %939 }
 0x3d5   : > { %v942_v60 = vmul.f32 %v940_v58, %v936_v59 }
 0x3d7   : > { %v943_v61 = vpack.c.bf16 %v942_v60, %v942_v60 }
 0x3d9   : > { %1222 = vmatmul.msk.bf16.vlgmr.msrb.gmra.mxu1 %vm454_vm1, %v943_v61 }
 0x3f2   : > { %v930_v62 = vpop.f32.mrf.mxu0 }
 0x3fa   : > { %v932_v63 = vpop.f32.mrf.mxu0 }
 0x43c   : > { %v993_v0 = vpop.f32.mrf.mxu2 }
 0x440   : > { %v911_v1 = vpop.f32.mrf.mxu3 }
 0x441   : > { %v931_v4 = vadd.f32 %v930_v62, %v911_v1 }
 0x444   : > { %v995_v2 = vpop.f32.mrf.mxu2 }
 0x448   : > { %v913_v3 = vpop.f32.mrf.mxu3 }
 0x456   : > { %v961_v5 = vpop.f32.mrf.mxu1 }
 0x457   : > { %v965_v6 = vadd.f32 %v961_v5, %v931_v4 }
 0x459   : > { %v997_v7 = vadd.f32 %v993_v0, %v965_v6 }
 0x45b   : > { %998 = vst [vmem:[%s400_s9] sm:$0xff] %v997_v7 }
 0x45c   : > { %1584 = shalt.err (!%p1581_p13)
}
 0x45d   : > { %1254 = dma.vmem_to_hbm [thread:$0]  (%p1796_p2), %s1014_s11, 128, %s1016_s12, %s1000_s10  }
 0x45e   : > { %v963_v8 = vpop.f32.mrf.mxu1 }
 0x45f PF: > { %s1027_s18 = sand.u32 1, %s1635_s21   ;;  %p1277_p0 = pnand %p1168_p6, %p1803_p5 }
 0x460   : > { %s1028_s4 = scalar_lea.sflag [#allocation8], %s1027_s18 }
 0x461   : > { %p1278_p4 = pneg %p1277_p0 }
 0x463   : > { %1630 = dma.done.wait (%p1278_p4), %s1028_s4, 128  }
 0x464   : > { %1632 = vsyncadd (%p1278_p4), %s1028_s4, 4294967168  ;;  %s27_s26 = sadd.s32 1, %s1655_s26   ;;  %s2055_s15 = sld [smem:[#allocation26_spill]] }
 0x465   : > { %p24_p7 = scmp.ge.s32.totalorder %s27_s26, 4   ;;  %s2056_s24 = sld [smem:[#allocation24_spill]] }
 0x466   : > { %s2057_s25 = sld [smem:[#allocation25_spill]]  ;;  %s2058_s21 = smov %s1639_s22 }
 0x467   : > { %s2059_s22 = smov %s1643_s23  ;;  %26 = sbr.rel (!%p24_p7) target bundleno = 15 (0xf), region = 138 }
 0x46a   : > { %s2060_s23 = smov %s2055_s15 }
 0x46c   :  { %1034 = vsyncpa [#allocation7], 1 }
 0x46d   :  { %1036 = vsyncpa [#allocation7 + $0x1], 1 }
 0x46e   :  { %1037 = vsyncpa [#allocation10], 1 }
 0x46f   :  { %1039 = vsyncpa [#allocation10 + $0x1], 1 }
 0x470   :  { %1040 = vsyncpa [#allocation13], 1 }
 0x471   :  { %1041 = vsyncpa [#allocation16], 1 }
 0x472   :  { %1042 = vsyncpa [#allocation8], 1 }
 0x473   :  { %1044 = vsyncpa [#allocation8 + $0x1], 1 }

</bundles_post_ra>
